<compile_context>
chip_gen: v5e
topology: v5e:2x2
jax: 0.10.0
libtpu: 0.0.40
codegen_flags: <defaults>
</compile_context>

<pallas_src>
import functools

import jax
import jax.numpy as jnp
from jax.experimental import pallas as pl
from jax.experimental.pallas import tpu as pltpu

HIDDEN_SIZE = 64
INPUT_SIZE = 2
NUM_LAYERS = 2
OUTPUT_SIZE = 1
OUT_PAD = 128          # lane-dense FC output width inside the kernel
SUBLANE = 8            # batch padded to a multiple of this


def lstm_kernel(x_ref,       # (T*Bp, I)   time-major, flattened
                wx_ref,      # (I, 8H)     wih0^T in layer-0 columns, 0 in layer-1
                badd_ref,    # (1, 8H)     fused biases, interleaved layout
                wr_ref,      # (2H, 8H)    block-diag wavefront weight
                wfc_ref,     # (H, OUT_PAD) zero-padded past col OUTPUT_SIZE
                bfc_ref,     # (1, OUT_PAD)
                out_ref,     # (Bp, OUT_PAD)
                a_ref,       # VMEM scratch (T*Bp, 8H): per-step additive term
                *, seq_len, batch):
    H = wr_ref.shape[0] // 2
    T = seq_len
    Bp = batch

    # ---- Prologue: layer-0 input projection for every timestep via two VPU
    # broadcast-FMAs (a K=2 contraction doesn't deserve the MXU).  Written to
    # VMEM scratch so it is NOT held live in vregs across the unrolled loop;
    # layer-1 columns of `a` are just the (time-invariant) layer-1 bias.
    x2 = x_ref[...]
    wx = wx_ref[...]
    a_ref[...] = (x2[:, 0:1] * wx[0:1, :]
                  + x2[:, 1:2] * wx[1:2, :]
                  + badd_ref[...])

    def packed_gates(g_all, c_both):
        # Interleaved layout [i0,i1 | f0,f1 | o0,o1 | g0,g1]: sigmoid over
        # exactly 6H (3 vregs), tanh over exactly 2H (1 vreg), and every
        # slice below is vreg-aligned (2H = 128 lanes).
        sg = jax.nn.sigmoid(g_all[:, 0:6 * H])
        gg = jnp.tanh(g_all[:, 6 * H:8 * H])
        i_b = sg[:, 0 * H:2 * H]
        f_b = sg[:, 2 * H:4 * H]
        o_b = sg[:, 4 * H:6 * H]
        c_new = f_b * c_both + i_b * gg
        h_new = o_b * jnp.tanh(c_new)
        return h_new, c_new          # packed [layer0, layer1] along lanes

    # ---- Wavefront step 0: layer-0 at t=0 only (previous state is zero, so
    # no matmul).  The packed update also produces layer-1 "t=-1" values,
    # which are forced back to zero with a lane mask so the real t=0 layer-1
    # step sees h1=c1=0.
    col = jax.lax.broadcasted_iota(jnp.int32, (Bp, 2 * H), 1)
    keep_l0 = (col < H).astype(jnp.float32)

    zeros2h = jnp.zeros((Bp, 2 * H), jnp.float32)
    h_both, c_both = packed_gates(a_ref[0:Bp, :], zeros2h)
    h_both = h_both * keep_l0
    c_both = c_both * keep_l0

    # ---- Wavefront steps 1..T: ONE block-diagonal matmul per step computes
    # layer-0 gates for time s and layer-1 gates for time s-1 from the packed
    # state [h0[s-1], h1[s-2]].  The weight ref is read at the matmul site
    # (not hoisted) and the additive slice is reloaded from scratch each step
    # so per-step vreg liveness stays small.  Fully unrolled (T static).
    for s in range(1, T + 1):
        a_idx = min(s, T - 1)   # at s == T only the (time-invariant) layer-1
                                # bias columns of this slice are used
        g_all = (jnp.dot(h_both, wr_ref[...],
                         preferred_element_type=jnp.float32)
                 + a_ref[a_idx * Bp:(a_idx + 1) * Bp, :])
        h_both, c_both = packed_gates(g_all, c_both)

    # ---- FC head on h1[T-1]; output padded to 128 lanes -> lane-dense store.
    h1_last = h_both[:, H:2 * H]
    out_ref[...] = (jnp.dot(h1_last, wfc_ref[...],
                            preferred_element_type=jnp.float32)
                    + bfc_ref[...])


def lstm_model_forward(x, params):
    """x: (B, T, input_size) float32 -> (B, output_size) float32."""
    B, T, I = x.shape
    H = HIDDEN_SIZE
    Bp = ((B + SUBLANE - 1) // SUBLANE) * SUBLANE

    # Time-major, batch padded to a sublane multiple, flattened to 2-D so the
    # prologue covers all timesteps at once.
    x_tbi = jnp.transpose(x, (1, 0, 2))                        # (T, B, I)
    x_pad = jnp.zeros((T, Bp, I), jnp.float32).at[:, :B, :].set(x_tbi)
    x2d = x_pad.reshape(T * Bp, I)

    kernel = functools.partial(lstm_kernel, seq_len=T, batch=Bp)
    vmem = pl.BlockSpec(memory_space=pltpu.MemorySpace.VMEM)

    out = pl.pallas_call(
        kernel,
        out_shape=jax.ShapeDtypeStruct((Bp, OUT_PAD), jnp.float32),
        in_specs=[vmem] * 6,
        out_specs=vmem,
        scratch_shapes=[pltpu.VMEM((T * Bp, 8 * H), jnp.float32)],
    )(x2d,
      params["wx"], params["badd"], params["wr"],
      params["wfc_pad"], params["bfc_pad"])

    return out[:B, :OUTPUT_SIZE]


def init_params(key):
    """Deterministic init mirroring PyTorch shapes, packed for the kernel."""
    H, I, O = HIDDEN_SIZE, INPUT_SIZE, OUTPUT_SIZE
    k = 1.0 / jnp.sqrt(H)
    keys = jax.random.split(key, 10)

    def u(kk, shape):
        return jax.random.uniform(kk, shape, jnp.float32, -k, k)

    # PyTorch parameter shapes (gate row order i, f, g, o).
    wih0 = u(keys[0], (4 * H, I))
    whh0 = u(keys[1], (4 * H, H))
    bih0 = u(keys[2], (4 * H,))
    bhh0 = u(keys[3], (4 * H,))
    wih1 = u(keys[4], (4 * H, H))
    whh1 = u(keys[5], (4 * H, H))
    bih1 = u(keys[6], (4 * H,))
    bhh1 = u(keys[7], (4 * H,))
    wfc = u(keys[8], (O, H))
    bfc = u(keys[9], (O,))

    def gate_blocks(wt):
        # wt: (rows, 4H) with PyTorch column order [i, f, g, o]
        return (wt[:, 0:H], wt[:, H:2 * H], wt[:, 2 * H:3 * H], wt[:, 3 * H:4 * H])

    # Block-diagonal wavefront weight (2H, 8H), interleaved gate columns
    # [i0,i1 | f0,f1 | o0,o1 | g0,g1]:
    #   rows 0:H  (h0) -> layer-0 recurrent (whh0^T) + layer-1 input (wih1^T)
    #   rows H:2H (h1) -> zeros               + layer-1 recurrent (whh1^T)
    i0, f0, g0, o0 = gate_blocks(whh0.T)
    i1a, f1a, g1a, o1a = gate_blocks(wih1.T)
    i1b, f1b, g1b, o1b = gate_blocks(whh1.T)
    zhh = jnp.zeros((H, H), jnp.float32)
    wr = jnp.concatenate([
        jnp.concatenate([i0, i1a, f0, f1a, o0, o1a, g0, g1a], axis=1),
        jnp.concatenate([zhh, i1b, zhh, f1b, zhh, o1b, zhh, g1b], axis=1),
    ], axis=0)                                                 # (2H, 8H)

    # Input-projection weight (I, 8H): wih0^T in the layer-0 columns, zeros in
    # the layer-1 columns.  Fused biases in the same interleaved layout
    # (layer-0 positions: bih0+bhh0, layer-1 positions: bih1+bhh1).
    ix, fx, gx, ox = gate_blocks(wih0.T)
    zx = jnp.zeros((I, H), jnp.float32)
    wx = jnp.concatenate([ix, zx, fx, zx, ox, zx, gx, zx], axis=1)   # (I, 8H)

    b0 = (bih0 + bhh0)[None, :]
    b1 = (bih1 + bhh1)[None, :]
    b0i, b0f, b0g, b0o = gate_blocks(b0)
    b1i, b1f, b1g, b1o = gate_blocks(b1)
    badd = jnp.concatenate([b0i, b1i, b0f, b1f, b0o, b1o, b0g, b1g],
                           axis=1)                              # (1, 8H)

    wfc_pad = jnp.zeros((H, OUT_PAD), jnp.float32).at[:, :O].set(wfc.T)
    bfc_pad = jnp.zeros((1, OUT_PAD), jnp.float32).at[:, :O].set(bfc[None, :])

    return {
        # kernel-packed operands
        "wx": wx, "badd": badd, "wr": wr,
        "wfc_pad": wfc_pad, "bfc_pad": bfc_pad,
        # unfused forms for the pure-JAX reference
        "wih0_t": wih0.T, "whh0_t": whh0.T, "b0": b0,
        "wih1_t": wih1.T, "whh1_t": whh1.T, "b1": b1,
        "wfc_t": wfc.T, "bfc": bfc[None, :],
    }


def lstm_model_ref(x, params):
    """Pure-JAX reference for correctness checking (unfused weights)."""
    H = HIDDEN_SIZE
    B, T, _ = x.shape

    def cell(x_t, h, c, wih, whh, b):
        g = x_t @ wih + h @ whh + b
        i = jax.nn.sigmoid(g[:, :H])
        f = jax.nn.sigmoid(g[:, H:2 * H])
        gg = jnp.tanh(g[:, 2 * H:3 * H])
        o = jax.nn.sigmoid(g[:, 3 * H:])
        c = f * c + i * gg
        h = o * jnp.tanh(c)
        return h, c

    h0 = c0 = h1 = c1 = jnp.zeros((B, H), jnp.float32)
    for t in range(T):
        h0, c0 = cell(x[:, t, :], h0, c0,
                      params["wih0_t"], params["whh0_t"], params["b0"])
        h1, c1 = cell(h0, h1, c1,
                      params["wih1_t"], params["whh1_t"], params["b1"])
    return h1 @ params["wfc_t"] + params["bfc"]


if __name__ == "__main__":
    key = jax.random.PRNGKey(0)
    k_x, k_p = jax.random.split(key)

    B, T = 2, 8
    x = jax.random.normal(k_x, (B, T, INPUT_SIZE), jnp.float32)
    params = init_params(k_p)

    out = lstm_model_forward(x, params)
    out = jax.block_until_ready(out)

    ref = lstm_model_ref(x, params)
    assert out.shape == (B, OUTPUT_SIZE)
    assert jnp.allclose(out, ref, atol=1e-5, rtol=1e-5), (out, ref)

    print("KERNEL_OK")
</pallas_src>

<mosaic_0001>
module attributes {stable_mosaic.version = 11 : i64} {
  func.func @lstm_kernel(%arg0: memref<64x2xf32, #tpu.memory_space<vmem>>, %arg1: memref<2x512xf32, #tpu.memory_space<vmem>>, %arg2: memref<1x512xf32, #tpu.memory_space<vmem>>, %arg3: memref<128x512xf32, #tpu.memory_space<vmem>>, %arg4: memref<64x128xf32, #tpu.memory_space<vmem>>, %arg5: memref<1x128xf32, #tpu.memory_space<vmem>>, %arg6: memref<8x128xf32, #tpu.memory_space<vmem>>, %arg7: memref<64x512xf32, #tpu.memory_space<vmem>>) attributes {dimension_semantics = [], scalar_prefetch = 0 : i64, scratch_operands = 1 : i64, tpu.core_type = #tpu.core_type<tc>} {
    %c0 = arith.constant 0 : index
    %c0_0 = arith.constant 0 : index
    %0 = vector.load %arg0[%c0, %c0_0] : memref<64x2xf32, #tpu.memory_space<vmem>>, vector<64x2xf32>
    %c0_1 = arith.constant 0 : index
    %c0_2 = arith.constant 0 : index
    %1 = vector.load %arg1[%c0_1, %c0_2] : memref<2x512xf32, #tpu.memory_space<vmem>>, vector<2x512xf32>
    %2 = vector.extract_strided_slice %0 {offsets = [0, 0], sizes = [64, 1], strides = [1, 1]} : vector<64x2xf32> to vector<64x1xf32>
    %3 = vector.extract_strided_slice %1 {offsets = [0, 0], sizes = [1, 512], strides = [1, 1]} : vector<2x512xf32> to vector<1x512xf32>
    %4 = vector.broadcast %2 : vector<64x1xf32> to vector<64x512xf32>
    %5 = vector.broadcast %3 : vector<1x512xf32> to vector<64x512xf32>
    %6 = arith.mulf %4, %5 : vector<64x512xf32>
    %7 = vector.extract_strided_slice %0 {offsets = [0, 1], sizes = [64, 1], strides = [1, 1]} : vector<64x2xf32> to vector<64x1xf32>
    %8 = vector.extract_strided_slice %1 {offsets = [1, 0], sizes = [1, 512], strides = [1, 1]} : vector<2x512xf32> to vector<1x512xf32>
    %9 = vector.broadcast %7 : vector<64x1xf32> to vector<64x512xf32>
    %10 = vector.broadcast %8 : vector<1x512xf32> to vector<64x512xf32>
    %11 = arith.mulf %9, %10 : vector<64x512xf32>
    %12 = arith.addf %6, %11 : vector<64x512xf32>
    %c0_3 = arith.constant 0 : index
    %c0_4 = arith.constant 0 : index
    %13 = vector.load %arg2[%c0_3, %c0_4] : memref<1x512xf32, #tpu.memory_space<vmem>>, vector<1x512xf32>
    %14 = vector.broadcast %13 : vector<1x512xf32> to vector<64x512xf32>
    %15 = arith.addf %12, %14 : vector<64x512xf32>
    %c0_5 = arith.constant 0 : index
    %c0_6 = arith.constant 0 : index
    %16 = vector.load %arg7[%c0_5, %c0_6] : memref<64x512xf32, #tpu.memory_space<vmem>>, vector<64x512xf32>
    tpu.vector_store %arg7[%c0_5, %c0_6], %15 {strides = array<i32>} : memref<64x512xf32, #tpu.memory_space<vmem>>, vector<64x512xf32>,
    %17 = tpu.iota {dimensions = array<i32: 1>} : vector<8x128xi32>
    %c64_i32 = arith.constant 64 : i32
    %18 = vector.broadcast %c64_i32 : i32 to vector<8x128xi32>
    %19 = arith.cmpi slt, %17, %18 : vector<8x128xi32>
    %20 = arith.extui %19 : vector<8x128xi1> to vector<8x128xi32>
    %21 = arith.sitofp %20 : vector<8x128xi32> to vector<8x128xf32>
    %cst = arith.constant 0.000000e+00 : f32
    %22 = vector.broadcast %cst : f32 to vector<8x128xf32>
    %c0_7 = arith.constant 0 : index
    %c0_8 = arith.constant 0 : index
    %23 = vector.load %arg7[%c0_7, %c0_8] : memref<64x512xf32, #tpu.memory_space<vmem>>, vector<8x512xf32>
    %24 = vector.extract_strided_slice %23 {offsets = [0, 0], sizes = [8, 384], strides = [1, 1]} : vector<8x512xf32> to vector<8x384xf32>
    %25 = arith.negf %24 : vector<8x384xf32>
    %26 = math.exp %25 : vector<8x384xf32>
    %cst_9 = arith.constant 1.000000e+00 : f32
    %27 = vector.broadcast %cst_9 : f32 to vector<8x384xf32>
    %28 = arith.addf %27, %26 : vector<8x384xf32>
    %29 = arith.divf %27, %28 : vector<8x384xf32>
    %30 = vector.extract_strided_slice %23 {offsets = [0, 384], sizes = [8, 128], strides = [1, 1]} : vector<8x512xf32> to vector<8x128xf32>
    %31 = math.tanh %30 : vector<8x128xf32>
    %32 = vector.extract_strided_slice %29 {offsets = [0, 0], sizes = [8, 128], strides = [1, 1]} : vector<8x384xf32> to vector<8x128xf32>
    %33 = vector.extract_strided_slice %29 {offsets = [0, 128], sizes = [8, 128], strides = [1, 1]} : vector<8x384xf32> to vector<8x128xf32>
    %34 = vector.extract_strided_slice %29 {offsets = [0, 256], sizes = [8, 128], strides = [1, 1]} : vector<8x384xf32> to vector<8x128xf32>
    %35 = arith.mulf %33, %22 : vector<8x128xf32>
    %36 = arith.mulf %32, %31 : vector<8x128xf32>
    %37 = arith.addf %35, %36 : vector<8x128xf32>
    %38 = math.tanh %37 : vector<8x128xf32>
    %39 = arith.mulf %34, %38 : vector<8x128xf32>
    %40 = arith.mulf %39, %21 : vector<8x128xf32>
    %41 = arith.mulf %37, %21 : vector<8x128xf32>
    %c0_10 = arith.constant 0 : index
    %c0_11 = arith.constant 0 : index
    %42 = vector.load %arg3[%c0_10, %c0_11] : memref<128x512xf32, #tpu.memory_space<vmem>>, vector<128x512xf32>
    %cst_12 = arith.constant dense<0.000000e+00> : vector<8x512xf32>
    %43 = tpu.matmul %40, %42, %cst_12 {dimension_numbers = #tpu.dot_dimension_numbers<[1], [0], [0], [1], [0, 0, 1, 1], [], []>} : vector<8x128xf32>, vector<128x512xf32>, vector<8x512xf32> -> vector<8x512xf32>
    %c8 = arith.constant 8 : index
    %c0_13 = arith.constant 0 : index
    %44 = vector.load %arg7[%c8, %c0_13] : memref<64x512xf32, #tpu.memory_space<vmem>>, vector<8x512xf32>
    %45 = arith.addf %43, %44 : vector<8x512xf32>
    %46 = vector.extract_strided_slice %45 {offsets = [0, 0], sizes = [8, 384], strides = [1, 1]} : vector<8x512xf32> to vector<8x384xf32>
    %47 = arith.negf %46 : vector<8x384xf32>
    %48 = math.exp %47 : vector<8x384xf32>
    %cst_14 = arith.constant 1.000000e+00 : f32
    %49 = vector.broadcast %cst_14 : f32 to vector<8x384xf32>
    %50 = arith.addf %49, %48 : vector<8x384xf32>
    %51 = arith.divf %49, %50 : vector<8x384xf32>
    %52 = vector.extract_strided_slice %45 {offsets = [0, 384], sizes = [8, 128], strides = [1, 1]} : vector<8x512xf32> to vector<8x128xf32>
    %53 = math.tanh %52 : vector<8x128xf32>
    %54 = vector.extract_strided_slice %51 {offsets = [0, 0], sizes = [8, 128], strides = [1, 1]} : vector<8x384xf32> to vector<8x128xf32>
    %55 = vector.extract_strided_slice %51 {offsets = [0, 128], sizes = [8, 128], strides = [1, 1]} : vector<8x384xf32> to vector<8x128xf32>
    %56 = vector.extract_strided_slice %51 {offsets = [0, 256], sizes = [8, 128], strides = [1, 1]} : vector<8x384xf32> to vector<8x128xf32>
    %57 = arith.mulf %55, %41 : vector<8x128xf32>
    %58 = arith.mulf %54, %53 : vector<8x128xf32>
    %59 = arith.addf %57, %58 : vector<8x128xf32>
    %60 = math.tanh %59 : vector<8x128xf32>
    %61 = arith.mulf %56, %60 : vector<8x128xf32>
    %c0_15 = arith.constant 0 : index
    %c0_16 = arith.constant 0 : index
    %62 = vector.load %arg3[%c0_15, %c0_16] : memref<128x512xf32, #tpu.memory_space<vmem>>, vector<128x512xf32>
    %cst_17 = arith.constant dense<0.000000e+00> : vector<8x512xf32>
    %63 = tpu.matmul %61, %62, %cst_17 {dimension_numbers = #tpu.dot_dimension_numbers<[1], [0], [0], [1], [0, 0, 1, 1], [], []>} : vector<8x128xf32>, vector<128x512xf32>, vector<8x512xf32> -> vector<8x512xf32>
    %c16 = arith.constant 16 : index
    %c0_18 = arith.constant 0 : index
    %64 = vector.load %arg7[%c16, %c0_18] : memref<64x512xf32, #tpu.memory_space<vmem>>, vector<8x512xf32>
    %65 = arith.addf %63, %64 : vector<8x512xf32>
    %66 = vector.extract_strided_slice %65 {offsets = [0, 0], sizes = [8, 384], strides = [1, 1]} : vector<8x512xf32> to vector<8x384xf32>
    %67 = arith.negf %66 : vector<8x384xf32>
    %68 = math.exp %67 : vector<8x384xf32>
    %cst_19 = arith.constant 1.000000e+00 : f32
    %69 = vector.broadcast %cst_19 : f32 to vector<8x384xf32>
    %70 = arith.addf %69, %68 : vector<8x384xf32>
    %71 = arith.divf %69, %70 : vector<8x384xf32>
    %72 = vector.extract_strided_slice %65 {offsets = [0, 384], sizes = [8, 128], strides = [1, 1]} : vector<8x512xf32> to vector<8x128xf32>
    %73 = math.tanh %72 : vector<8x128xf32>
    %74 = vector.extract_strided_slice %71 {offsets = [0, 0], sizes = [8, 128], strides = [1, 1]} : vector<8x384xf32> to vector<8x128xf32>
    %75 = vector.extract_strided_slice %71 {offsets = [0, 128], sizes = [8, 128], strides = [1, 1]} : vector<8x384xf32> to vector<8x128xf32>
    %76 = vector.extract_strided_slice %71 {offsets = [0, 256], sizes = [8, 128], strides = [1, 1]} : vector<8x384xf32> to vector<8x128xf32>
    %77 = arith.mulf %75, %59 : vector<8x128xf32>
    %78 = arith.mulf %74, %73 : vector<8x128xf32>
    %79 = arith.addf %77, %78 : vector<8x128xf32>
    %80 = math.tanh %79 : vector<8x128xf32>
    %81 = arith.mulf %76, %80 : vector<8x128xf32>
    %c0_20 = arith.constant 0 : index
    %c0_21 = arith.constant 0 : index
    %82 = vector.load %arg3[%c0_20, %c0_21] : memref<128x512xf32, #tpu.memory_space<vmem>>, vector<128x512xf32>
    %cst_22 = arith.constant dense<0.000000e+00> : vector<8x512xf32>
    %83 = tpu.matmul %81, %82, %cst_22 {dimension_numbers = #tpu.dot_dimension_numbers<[1], [0], [0], [1], [0, 0, 1, 1], [], []>} : vector<8x128xf32>, vector<128x512xf32>, vector<8x512xf32> -> vector<8x512xf32>
    %c24 = arith.constant 24 : index
    %c0_23 = arith.constant 0 : index
    %84 = vector.load %arg7[%c24, %c0_23] : memref<64x512xf32, #tpu.memory_space<vmem>>, vector<8x512xf32>
    %85 = arith.addf %83, %84 : vector<8x512xf32>
    %86 = vector.extract_strided_slice %85 {offsets = [0, 0], sizes = [8, 384], strides = [1, 1]} : vector<8x512xf32> to vector<8x384xf32>
    %87 = arith.negf %86 : vector<8x384xf32>
    %88 = math.exp %87 : vector<8x384xf32>
    %cst_24 = arith.constant 1.000000e+00 : f32
    %89 = vector.broadcast %cst_24 : f32 to vector<8x384xf32>
    %90 = arith.addf %89, %88 : vector<8x384xf32>
    %91 = arith.divf %89, %90 : vector<8x384xf32>
    %92 = vector.extract_strided_slice %85 {offsets = [0, 384], sizes = [8, 128], strides = [1, 1]} : vector<8x512xf32> to vector<8x128xf32>
    %93 = math.tanh %92 : vector<8x128xf32>
    %94 = vector.extract_strided_slice %91 {offsets = [0, 0], sizes = [8, 128], strides = [1, 1]} : vector<8x384xf32> to vector<8x128xf32>
    %95 = vector.extract_strided_slice %91 {offsets = [0, 128], sizes = [8, 128], strides = [1, 1]} : vector<8x384xf32> to vector<8x128xf32>
    %96 = vector.extract_strided_slice %91 {offsets = [0, 256], sizes = [8, 128], strides = [1, 1]} : vector<8x384xf32> to vector<8x128xf32>
    %97 = arith.mulf %95, %79 : vector<8x128xf32>
    %98 = arith.mulf %94, %93 : vector<8x128xf32>
    %99 = arith.addf %97, %98 : vector<8x128xf32>
    %100 = math.tanh %99 : vector<8x128xf32>
    %101 = arith.mulf %96, %100 : vector<8x128xf32>
    %c0_25 = arith.constant 0 : index
    %c0_26 = arith.constant 0 : index
    %102 = vector.load %arg3[%c0_25, %c0_26] : memref<128x512xf32, #tpu.memory_space<vmem>>, vector<128x512xf32>
    %cst_27 = arith.constant dense<0.000000e+00> : vector<8x512xf32>
    %103 = tpu.matmul %101, %102, %cst_27 {dimension_numbers = #tpu.dot_dimension_numbers<[1], [0], [0], [1], [0, 0, 1, 1], [], []>} : vector<8x128xf32>, vector<128x512xf32>, vector<8x512xf32> -> vector<8x512xf32>
    %c32 = arith.constant 32 : index
    %c0_28 = arith.constant 0 : index
    %104 = vector.load %arg7[%c32, %c0_28] : memref<64x512xf32, #tpu.memory_space<vmem>>, vector<8x512xf32>
    %105 = arith.addf %103, %104 : vector<8x512xf32>
    %106 = vector.extract_strided_slice %105 {offsets = [0, 0], sizes = [8, 384], strides = [1, 1]} : vector<8x512xf32> to vector<8x384xf32>
    %107 = arith.negf %106 : vector<8x384xf32>
    %108 = math.exp %107 : vector<8x384xf32>
    %cst_29 = arith.constant 1.000000e+00 : f32
    %109 = vector.broadcast %cst_29 : f32 to vector<8x384xf32>
    %110 = arith.addf %109, %108 : vector<8x384xf32>
    %111 = arith.divf %109, %110 : vector<8x384xf32>
    %112 = vector.extract_strided_slice %105 {offsets = [0, 384], sizes = [8, 128], strides = [1, 1]} : vector<8x512xf32> to vector<8x128xf32>
    %113 = math.tanh %112 : vector<8x128xf32>
    %114 = vector.extract_strided_slice %111 {offsets = [0, 0], sizes = [8, 128], strides = [1, 1]} : vector<8x384xf32> to vector<8x128xf32>
    %115 = vector.extract_strided_slice %111 {offsets = [0, 128], sizes = [8, 128], strides = [1, 1]} : vector<8x384xf32> to vector<8x128xf32>
    %116 = vector.extract_strided_slice %111 {offsets = [0, 256], sizes = [8, 128], strides = [1, 1]} : vector<8x384xf32> to vector<8x128xf32>
    %117 = arith.mulf %115, %99 : vector<8x128xf32>
    %118 = arith.mulf %114, %113 : vector<8x128xf32>
    %119 = arith.addf %117, %118 : vector<8x128xf32>
    %120 = math.tanh %119 : vector<8x128xf32>
    %121 = arith.mulf %116, %120 : vector<8x128xf32>
    %c0_30 = arith.constant 0 : index
    %c0_31 = arith.constant 0 : index
    %122 = vector.load %arg3[%c0_30, %c0_31] : memref<128x512xf32, #tpu.memory_space<vmem>>, vector<128x512xf32>
    %cst_32 = arith.constant dense<0.000000e+00> : vector<8x512xf32>
    %123 = tpu.matmul %121, %122, %cst_32 {dimension_numbers = #tpu.dot_dimension_numbers<[1], [0], [0], [1], [0, 0, 1, 1], [], []>} : vector<8x128xf32>, vector<128x512xf32>, vector<8x512xf32> -> vector<8x512xf32>
    %c40 = arith.constant 40 : index
    %c0_33 = arith.constant 0 : index
    %124 = vector.load %arg7[%c40, %c0_33] : memref<64x512xf32, #tpu.memory_space<vmem>>, vector<8x512xf32>
    %125 = arith.addf %123, %124 : vector<8x512xf32>
    %126 = vector.extract_strided_slice %125 {offsets = [0, 0], sizes = [8, 384], strides = [1, 1]} : vector<8x512xf32> to vector<8x384xf32>
    %127 = arith.negf %126 : vector<8x384xf32>
    %128 = math.exp %127 : vector<8x384xf32>
    %cst_34 = arith.constant 1.000000e+00 : f32
    %129 = vector.broadcast %cst_34 : f32 to vector<8x384xf32>
    %130 = arith.addf %129, %128 : vector<8x384xf32>
    %131 = arith.divf %129, %130 : vector<8x384xf32>
    %132 = vector.extract_strided_slice %125 {offsets = [0, 384], sizes = [8, 128], strides = [1, 1]} : vector<8x512xf32> to vector<8x128xf32>
    %133 = math.tanh %132 : vector<8x128xf32>
    %134 = vector.extract_strided_slice %131 {offsets = [0, 0], sizes = [8, 128], strides = [1, 1]} : vector<8x384xf32> to vector<8x128xf32>
    %135 = vector.extract_strided_slice %131 {offsets = [0, 128], sizes = [8, 128], strides = [1, 1]} : vector<8x384xf32> to vector<8x128xf32>
    %136 = vector.extract_strided_slice %131 {offsets = [0, 256], sizes = [8, 128], strides = [1, 1]} : vector<8x384xf32> to vector<8x128xf32>
    %137 = arith.mulf %135, %119 : vector<8x128xf32>
    %138 = arith.mulf %134, %133 : vector<8x128xf32>
    %139 = arith.addf %137, %138 : vector<8x128xf32>
    %140 = math.tanh %139 : vector<8x128xf32>
    %141 = arith.mulf %136, %140 : vector<8x128xf32>
    %c0_35 = arith.constant 0 : index
    %c0_36 = arith.constant 0 : index
    %142 = vector.load %arg3[%c0_35, %c0_36] : memref<128x512xf32, #tpu.memory_space<vmem>>, vector<128x512xf32>
    %cst_37 = arith.constant dense<0.000000e+00> : vector<8x512xf32>
    %143 = tpu.matmul %141, %142, %cst_37 {dimension_numbers = #tpu.dot_dimension_numbers<[1], [0], [0], [1], [0, 0, 1, 1], [], []>} : vector<8x128xf32>, vector<128x512xf32>, vector<8x512xf32> -> vector<8x512xf32>
    %c48 = arith.constant 48 : index
    %c0_38 = arith.constant 0 : index
    %144 = vector.load %arg7[%c48, %c0_38] : memref<64x512xf32, #tpu.memory_space<vmem>>, vector<8x512xf32>
    %145 = arith.addf %143, %144 : vector<8x512xf32>
    %146 = vector.extract_strided_slice %145 {offsets = [0, 0], sizes = [8, 384], strides = [1, 1]} : vector<8x512xf32> to vector<8x384xf32>
    %147 = arith.negf %146 : vector<8x384xf32>
    %148 = math.exp %147 : vector<8x384xf32>
    %cst_39 = arith.constant 1.000000e+00 : f32
    %149 = vector.broadcast %cst_39 : f32 to vector<8x384xf32>
    %150 = arith.addf %149, %148 : vector<8x384xf32>
    %151 = arith.divf %149, %150 : vector<8x384xf32>
    %152 = vector.extract_strided_slice %145 {offsets = [0, 384], sizes = [8, 128], strides = [1, 1]} : vector<8x512xf32> to vector<8x128xf32>
    %153 = math.tanh %152 : vector<8x128xf32>
    %154 = vector.extract_strided_slice %151 {offsets = [0, 0], sizes = [8, 128], strides = [1, 1]} : vector<8x384xf32> to vector<8x128xf32>
    %155 = vector.extract_strided_slice %151 {offsets = [0, 128], sizes = [8, 128], strides = [1, 1]} : vector<8x384xf32> to vector<8x128xf32>
    %156 = vector.extract_strided_slice %151 {offsets = [0, 256], sizes = [8, 128], strides = [1, 1]} : vector<8x384xf32> to vector<8x128xf32>
    %157 = arith.mulf %155, %139 : vector<8x128xf32>
    %158 = arith.mulf %154, %153 : vector<8x128xf32>
    %159 = arith.addf %157, %158 : vector<8x128xf32>
    %160 = math.tanh %159 : vector<8x128xf32>
    %161 = arith.mulf %156, %160 : vector<8x128xf32>
    %c0_40 = arith.constant 0 : index
    %c0_41 = arith.constant 0 : index
    %162 = vector.load %arg3[%c0_40, %c0_41] : memref<128x512xf32, #tpu.memory_space<vmem>>, vector<128x512xf32>
    %cst_42 = arith.constant dense<0.000000e+00> : vector<8x512xf32>
    %163 = tpu.matmul %161, %162, %cst_42 {dimension_numbers = #tpu.dot_dimension_numbers<[1], [0], [0], [1], [0, 0, 1, 1], [], []>} : vector<8x128xf32>, vector<128x512xf32>, vector<8x512xf32> -> vector<8x512xf32>
    %c56 = arith.constant 56 : index
    %c0_43 = arith.constant 0 : index
    %164 = vector.load %arg7[%c56, %c0_43] : memref<64x512xf32, #tpu.memory_space<vmem>>, vector<8x512xf32>
    %165 = arith.addf %163, %164 : vector<8x512xf32>
    %166 = vector.extract_strided_slice %165 {offsets = [0, 0], sizes = [8, 384], strides = [1, 1]} : vector<8x512xf32> to vector<8x384xf32>
    %167 = arith.negf %166 : vector<8x384xf32>
    %168 = math.exp %167 : vector<8x384xf32>
    %cst_44 = arith.constant 1.000000e+00 : f32
    %169 = vector.broadcast %cst_44 : f32 to vector<8x384xf32>
    %170 = arith.addf %169, %168 : vector<8x384xf32>
    %171 = arith.divf %169, %170 : vector<8x384xf32>
    %172 = vector.extract_strided_slice %165 {offsets = [0, 384], sizes = [8, 128], strides = [1, 1]} : vector<8x512xf32> to vector<8x128xf32>
    %173 = math.tanh %172 : vector<8x128xf32>
    %174 = vector.extract_strided_slice %171 {offsets = [0, 0], sizes = [8, 128], strides = [1, 1]} : vector<8x384xf32> to vector<8x128xf32>
    %175 = vector.extract_strided_slice %171 {offsets = [0, 128], sizes = [8, 128], strides = [1, 1]} : vector<8x384xf32> to vector<8x128xf32>
    %176 = vector.extract_strided_slice %171 {offsets = [0, 256], sizes = [8, 128], strides = [1, 1]} : vector<8x384xf32> to vector<8x128xf32>
    %177 = arith.mulf %175, %159 : vector<8x128xf32>
    %178 = arith.mulf %174, %173 : vector<8x128xf32>
    %179 = arith.addf %177, %178 : vector<8x128xf32>
    %180 = math.tanh %179 : vector<8x128xf32>
    %181 = arith.mulf %176, %180 : vector<8x128xf32>
    %c0_45 = arith.constant 0 : index
    %c0_46 = arith.constant 0 : index
    %182 = vector.load %arg3[%c0_45, %c0_46] : memref<128x512xf32, #tpu.memory_space<vmem>>, vector<128x512xf32>
    %cst_47 = arith.constant dense<0.000000e+00> : vector<8x512xf32>
    %183 = tpu.matmul %181, %182, %cst_47 {dimension_numbers = #tpu.dot_dimension_numbers<[1], [0], [0], [1], [0, 0, 1, 1], [], []>} : vector<8x128xf32>, vector<128x512xf32>, vector<8x512xf32> -> vector<8x512xf32>
    %c56_48 = arith.constant 56 : index
    %c0_49 = arith.constant 0 : index
    %184 = vector.load %arg7[%c56_48, %c0_49] : memref<64x512xf32, #tpu.memory_space<vmem>>, vector<8x512xf32>
    %185 = arith.addf %183, %184 : vector<8x512xf32>
    %186 = vector.extract_strided_slice %185 {offsets = [0, 0], sizes = [8, 384], strides = [1, 1]} : vector<8x512xf32> to vector<8x384xf32>
    %187 = arith.negf %186 : vector<8x384xf32>
    %188 = math.exp %187 : vector<8x384xf32>
    %cst_50 = arith.constant 1.000000e+00 : f32
    %189 = vector.broadcast %cst_50 : f32 to vector<8x384xf32>
    %190 = arith.addf %189, %188 : vector<8x384xf32>
    %191 = arith.divf %189, %190 : vector<8x384xf32>
    %192 = vector.extract_strided_slice %185 {offsets = [0, 384], sizes = [8, 128], strides = [1, 1]} : vector<8x512xf32> to vector<8x128xf32>
    %193 = math.tanh %192 : vector<8x128xf32>
    %194 = vector.extract_strided_slice %191 {offsets = [0, 0], sizes = [8, 128], strides = [1, 1]} : vector<8x384xf32> to vector<8x128xf32>
    %195 = vector.extract_strided_slice %191 {offsets = [0, 128], sizes = [8, 128], strides = [1, 1]} : vector<8x384xf32> to vector<8x128xf32>
    %196 = vector.extract_strided_slice %191 {offsets = [0, 256], sizes = [8, 128], strides = [1, 1]} : vector<8x384xf32> to vector<8x128xf32>
    %197 = arith.mulf %195, %179 : vector<8x128xf32>
    %198 = arith.mulf %194, %193 : vector<8x128xf32>
    %199 = arith.addf %197, %198 : vector<8x128xf32>
    %200 = math.tanh %199 : vector<8x128xf32>
    %201 = arith.mulf %196, %200 : vector<8x128xf32>
    %202 = vector.extract_strided_slice %201 {offsets = [0, 64], sizes = [8, 64], strides = [1, 1]} : vector<8x128xf32> to vector<8x64xf32>
    %c0_51 = arith.constant 0 : index
    %c0_52 = arith.constant 0 : index
    %203 = vector.load %arg4[%c0_51, %c0_52] : memref<64x128xf32, #tpu.memory_space<vmem>>, vector<64x128xf32>
    %cst_53 = arith.constant dense<0.000000e+00> : vector<8x128xf32>
    %204 = tpu.matmul %202, %203, %cst_53 {dimension_numbers = #tpu.dot_dimension_numbers<[1], [0], [0], [1], [0, 0, 1, 1], [], []>} : vector<8x64xf32>, vector<64x128xf32>, vector<8x128xf32> -> vector<8x128xf32>
    %c0_54 = arith.constant 0 : index
    %c0_55 = arith.constant 0 : index
    %205 = vector.load %arg5[%c0_54, %c0_55] : memref<1x128xf32, #tpu.memory_space<vmem>>, vector<1x128xf32>
    %206 = vector.broadcast %205 : vector<1x128xf32> to vector<8x128xf32>
    %207 = arith.addf %204, %206 : vector<8x128xf32>
    %c0_56 = arith.constant 0 : index
    %c0_57 = arith.constant 0 : index
    %208 = vector.load %arg6[%c0_56, %c0_57] : memref<8x128xf32, #tpu.memory_space<vmem>>, vector<8x128xf32>
    tpu.vector_store %arg6[%c0_56, %c0_57], %207 {strides = array<i32>} : memref<8x128xf32, #tpu.memory_space<vmem>>, vector<8x128xf32>,
    return
  }
}

</mosaic_0001>

<bundles_post_ra>
// kernel: tpu_custom_call.1
= control target key start
LH: loop header
LB: loop body
LE: loop exit
PB: predicated region body
PF: predicated region fallthrough
CT: control target
= control target key end

     0   :  { %11 = vsyncpa [#allocation4], 0  ;;  %s3148_s0 = inlined_call_operand.vmem [shape: f32[64,2], index: 0, kind: input, shape index: {}]   ;;  %s3149_s1 = inlined_call_operand.hbm [shape: f32[2,512], index: 1, kind: input, shape index: {}]   ;;  %s3150_s2 = inlined_call_operand.vmem [shape: f32[1,512], index: 2, kind: input, shape index: {}]   ;;  %s3151_s3 = inlined_call_operand.hbm [shape: f32[128,512], index: 3, kind: input, shape index: {}]   ;;  %s3152_s4 = inlined_call_operand.vmem [shape: f32[64,128], index: 4, kind: input, shape index: {}]   ;;  %s3153_s5 = inlined_call_operand.vmem [shape: f32[1,128], index: 5, kind: input, shape index: {}]   ;;  %s3154_s6 = inlined_call_operand.hbm [shape: f32[8,128], index: 6, kind: output, shape index: {}]  }
   0x1   :  { %12 = vsyncpa [#allocation7], 0 }
   0x2   :  { %13 = vsyncpa [#allocation5], 0  ;;  %s21_s23 = sshll.u32 %s3149_s1, 4  ;;  %s2035_s24 = smov [#allocation3]   ;;  %s22_s23 = int_to_ptr.hbm [resolvable:$true] %s21_s23 }
   0x3   :  { %s23_s25 = sshll.u32 %s2035_s24, 4  ;;  %s33_s28 = sshll.u32 %s3151_s3, 4  ;;  %s24_s25 = int_to_ptr.vmem [resolvable:$true] %s23_s25  ;;  %s34_s28 = int_to_ptr.hbm [resolvable:$true] %s33_s28 }
   0x4   :  { %26 = dma.hbm_to_vmem [thread:$0]  %s22_s23, 128, %s24_s25, [#allocation4]  }
   0x5   :  { %s2036_s29 = smov [#allocation6]   ;;  %s2037_s7 = smov 512  }
   0x6   :  { %s35_s30 = sshll.u32 %s2036_s29, 4  ;;  %s2038_s8 = smov 32   ;;  %s36_s30 = int_to_ptr.vmem [resolvable:$true] %s35_s30 }
   0x7   :  { %41 = dma.hbm_to_vmem [thread:$0]  %s34_s28, 8192, %s36_s30, [#allocation7], %s2037_s7, %s2037_s7, %s2038_s8  }
   0x8   :  { %2029 = dma.done.wait [#allocation4], 128  }
   0x9   :  { %2030 = vsyncadd [#allocation4], 4294967168 }
   0xa   :  { %2031 = dma.done.wait [#allocation7], 8192  }
   0xb   :  { %2032 = vsyncadd [#allocation7], 4294959104  ;;  %v3155_v0 = vmov 0   ;;  %v54_v1 = vld [vmem:[%s3148_s0] sm:$0xff]  ;;  %v3157_v2 = vmov 1   ;;  %v2093_v3 = vld [vmem:[#allocation6 + $0x1e0] sm:$0xff] }
   0xc   :  { %1735 = vset.pattern.permute.xlu0 %v3155_v0  ;;  %1737 = vset.pattern.permute.xlu1 %v3155_v0  ;;  %3323 = vst [vmem:[#allocation12_spill] sm:$0xff] %v2093_v3  ;;  %v2095_v4 = vld [vmem:[#allocation6 + $0x1e8] sm:$0xff]  ;;  %v2097_v5 = vld [vmem:[#allocation6 + $0x1f0] sm:$0xff]  ;;  %v2099_v6 = vld [vmem:[#allocation3] sm:$0xff]  ;;  %s2043_s14 = smov [#allocation8]   ;;  %s1686_s18 = sshll.u32 %s3154_s6, 4  ;;  %s1687_s18 = int_to_ptr.hbm [resolvable:$true] %s1686_s18 }
   0xd   :  { %1739 = vset.pattern.permute.xlu2 %v3155_v0  ;;  %65 = vperm.xlu0 %1735, %v54_v1   ;;  %3324 = vst [vmem:[#allocation13_spill] sm:$0xff] %v2095_v4  ;;  %v2103_v7 = vld [vmem:[#allocation6 + $0x1f8] sm:$0xff]  ;;  %v2107_v8 = vld [vmem:[#allocation6 + $0x1c0] sm:$0xff]  ;;  %v2109_v9 = vld [vmem:[#allocation6 + $0x1c8] sm:$0xff]  ;;  %v104_v13 = vperm.slane %v2099_v6, 0  ;;  %v105_v14 = vperm.slane %v2099_v6, 2 }
   0xe   :  { %3325 = vst [vmem:[#allocation14_spill] sm:$0xff] %v2097_v5  ;;  %472 = vmatpush.msra.mxu0 %v2093_v3  ;;  %492 = vmatpush.msra.mxu1 %v2095_v4  ;;  %v2111_v10 = vld [vmem:[#allocation6 + $0x1d0] sm:$0xff]  ;;  %v2117_v12 = vld [vmem:[#allocation6 + $0x1d8] sm:$0xff]  ;;  %v106_v15 = vperm.slane %v2099_v6, 4  ;;  %v2123_v16 = vld [vmem:[#allocation6 + $0x1a0] sm:$0xff]  ;;  %v180_v19 = vperm.slane %v2099_v6, 1 }
   0xf   :  { %512 = vmatpush.msra.mxu2 %v2097_v5  ;;  %532 = vmatpush.msra.mxu3 %v2103_v7  ;;  %3326 = vst [vmem:[#allocation15_spill] sm:$0xff] %v2107_v8  ;;  %v2125_v17 = vld [vmem:[#allocation6 + $0x1a8] sm:$0xff]  ;;  %v2127_v18 = vld [vmem:[#allocation6 + $0x1b0] sm:$0xff]  ;;  %v181_v20 = vperm.slane %v2099_v6, 3  ;;  %v182_v21 = vperm.slane %v2099_v6, 5  ;;  %v2134_v22 = vld [vmem:[#allocation6 + $0x1b8] sm:$0xff] }
  0x10   :  { %3327 = vst [vmem:[#allocation16_spill] sm:$0xff] %v2109_v9  ;;  %473 = vmatpush.msra.mxu0 %v2107_v8  ;;  %493 = vmatpush.msra.mxu1 %v2109_v9  ;;  %v2136_v23 = vld [vmem:[#allocation6 + $0x180] sm:$0xff]  ;;  %v2138_v24 = vld [vmem:[#allocation6 + $0x188] sm:$0xff]  ;;  %v2142_v25 = vld [vmem:[#allocation6 + $0x190] sm:$0xff]  ;;  %v2154_v30 = vperm.slane %v104_v13, 0  ;;  %v2156_v31 = vperm.slane %v105_v14, 0 }
  0x11   :  { %3328 = vst [vmem:[#allocation17_spill] sm:$0xff] %v2111_v10  ;;  %513 = vmatpush.msra.mxu2 %v2111_v10  ;;  %533 = vmatpush.msra.mxu3 %v2117_v12  ;;  %v2144_v26 = vld [vmem:[#allocation6 + $0x198] sm:$0xff]  ;;  %v2146_v27 = vld [vmem:[#allocation6 + $0x160] sm:$0xff]  ;;  %v2150_v28 = vld [vmem:[#allocation6 + $0x168] sm:$0xff]  ;;  %v2169_v35 = vperm.slane %v106_v15, 0  ;;  %v2171_v36 = vperm.slane %v180_v19, 1 }
  0x12   :  { %3329 = vst [vmem:[#allocation18_spill] sm:$0xff] %v2127_v18  ;;  %474 = vmatpush.msra.mxu0 %v2123_v16  ;;  %494 = vmatpush.msra.mxu1 %v2125_v17  ;;  %v2152_v29 = vld [vmem:[#allocation6 + $0x170] sm:$0xff]  ;;  %v2161_v32 = vld [vmem:[%s3150_s2] sm:$0xf]  ;;  %v2167_v34 = vld [vmem:[#allocation6 + $0x140] sm:$0xff]  ;;  %v2173_v37 = vperm.slane %v181_v20, 1 }
  0x13   :  { %514 = vmatpush.msra.mxu2 %v2127_v18  ;;  %534 = vmatpush.msra.mxu3 %v2134_v22  ;;  %3330 = vst [vmem:[#allocation19_spill] sm:$0xff] %v2154_v30  ;;  %v2165_v33 = vld [vmem:[#allocation6 + $0x178] sm:$0xff]  ;;  %v2175_v38 = vperm.slane %v182_v21, 1  ;;  %v2179_v39 = vld [vmem:[#allocation6 + $0x148] sm:$0xff]  ;;  %v2181_v40 = vld [vmem:[#allocation6 + $0x150] sm:$0xff]  ;;  %v2188_v42 = vperm.slane %v2161_v32, 0 }
  0x14   :  { %475 = vmatpush.msra.mxu0 %v2136_v23  ;;  %3331 = vst [vmem:[#allocation20_spill] sm:$0xff] %v2156_v31  ;;  %495 = vmatpush.msra.mxu1 %v2138_v24  ;;  %v2185_v41 = vld [vmem:[#allocation6 + $0x158] sm:$0xff]  ;;  %v2192_v43 = vld [vmem:[#allocation6 + $0x120] sm:$0xff]  ;;  %v2194_v44 = vld [vmem:[#allocation6 + $0x128] sm:$0xff]  ;;  %v2201_v47 = vperm.slane %v2161_v32, 1  ;;  %v2204_v48 = vperm.slane %v2161_v32, 2 }
  0x15   :  { %1736 = vset.pattern.permute.xlu0 %v3157_v2  ;;  %515 = vmatpush.msra.mxu2 %v2142_v25  ;;  %3332 = vst [vmem:[#allocation21_spill] sm:$0xff] %v2169_v35  ;;  %v2210_v50 = vld [vmem:[#allocation6 + $0x130] sm:$0xff]  ;;  %v2221_v55 = vld [vmem:[#allocation6 + $0x138] sm:$0xff]  ;;  %v2223_v56 = vld [vmem:[#allocation6 + $0x100] sm:$0xff]  ;;  %s1684_s15 = sshll.u32 %s2043_s14, 4  ;;  %s1685_s15 = int_to_ptr.vmem [resolvable:$true] %s1684_s15 }
  0x16   :  { %149 = vperm.xlu0 %1736, %v54_v1   ;;  %3333 = vst [vmem:[#allocation22_spill] sm:$0xff] %v2171_v36  ;;  %535 = vmatpush.msra.mxu3 %v2144_v26  ;;  %v2227_v57 = vld [vmem:[#allocation6 + $0x108] sm:$0xff]  ;;  %v2230_v61 = vld [vmem:[#allocation6 + $0x110] sm:$0xff]  ;;  %v2232_v62 = vld [vmem:[#allocation6 + $0x118] sm:$0xff] }
  0x17   :  { %3334 = vst [vmem:[#allocation23_spill] sm:$0xff] %v2173_v37  ;;  %476 = vmatpush.msra.mxu0 %v2146_v27  ;;  %496 = vmatpush.msra.mxu1 %v2150_v28  ;;  %v2236_v63 = vld [vmem:[#allocation6 + $0xe0] sm:$0xff]  ;;  %v2238_v1 = vld [vmem:[#allocation6 + $0xe8] sm:$0xff]  ;;  %v2244_v19 = vld [vmem:[#allocation6 + $0xf0] sm:$0xff] }
  0x18   :  { %3335 = vst [vmem:[#allocation24_spill] sm:$0xff] %v2175_v38  ;;  %516 = vmatpush.msra.mxu2 %v2152_v29  ;;  %536 = vmatpush.msra.mxu3 %v2165_v33  ;;  %v2246_v20 = vld [vmem:[#allocation6 + $0xf8] sm:$0xff]  ;;  %v2248_v21 = vld [vmem:[#allocation6 + $0xc0] sm:$0xff] }
  0x19   :  { %3336 = vst [vmem:[#allocation25_spill] sm:$0xff] %v2188_v42  ;;  %477 = vmatpush.msra.mxu0 %v2167_v34  ;;  %497 = vmatpush.msra.mxu1 %v2179_v39  ;;  %v2279_v2 = vld [vmem:[#allocation6 + $0x80] sm:$0xff] }
  0x1a   :  { %3337 = vst [vmem:[#allocation26_spill] sm:$0xff] %v2201_v47  ;;  %517 = vmatpush.msra.mxu2 %v2181_v40  ;;  %537 = vmatpush.msra.mxu3 %v2185_v41 }
  0x1b   :  { %3338 = vst [vmem:[#allocation27_spill] sm:$0xff] %v2204_v48  ;;  %478 = vmatpush.msra.mxu0 %v2192_v43  ;;  %498 = vmatpush.msra.mxu1 %v2194_v44 }
  0x1c   :  { %518 = vmatpush.msra.mxu2 %v2210_v50  ;;  %538 = vmatpush.msra.mxu3 %v2221_v55  ;;  %3346 = vst [vmem:[#allocation35_spill] sm:$0xff] %v2279_v2 }
  0x1d   :  { %479 = vmatpush.msra.mxu0 %v2223_v56  ;;  %499 = vmatpush.msra.mxu1 %v2227_v57 }
  0x1e   :  { %1742 = vset.pattern.permute.xlu0 %v3155_v0  ;;  %519 = vmatpush.msra.mxu2 %v2230_v61  ;;  %v2277_v0 = vld [vmem:[#allocation6 + $0xb8] sm:$0xff] }
  0x1f   :  { %539 = vmatpush.msra.mxu3 %v2232_v62  ;;  %480 = vmatpush.msra.mxu0 %v2236_v63  ;;  %3345 = vst [vmem:[#allocation34_spill] sm:$0xff] %v2277_v0 }
  0x20   :  { %500 = vmatpush.msra.mxu1 %v2238_v1  ;;  %520 = vmatpush.msra.mxu2 %v2244_v19 }
  0x21   :  { %540 = vmatpush.msra.mxu3 %v2246_v20  ;;  %481 = vmatpush.msra.mxu0 %v2248_v21 }
  0x7f   :  { %v2113_v11 = vpop.permute.xlu0 %65 }
  0x80   :  { %v116_v45 = vmul.f32 %v2154_v30, %v2113_v11  ;;  %v117_v46 = vmul.f32 %v2156_v31, %v2113_v11  ;;  %v118_v51 = vmul.f32 %v2169_v35, %v2113_v11  ;;  %v2306_v35 = vld [vmem:[#allocation6 + $0x40] sm:$0xff]  ;;  %v2312_v31 = vld [vmem:[#allocation6 + $0x50] sm:$0xff] }
  0x81   :  { %3356 = vst [vmem:[#allocation45_spill] sm:$0xff] %v2306_v35 }
  0x82   :  { %3358 = vst [vmem:[#allocation47_spill] sm:$0xff] %v2312_v31 }
  0x88   :  { %v2206_v49 = vpop.permute.xlu0 %149 }
  0x89   :  { %v192_v52 = vmul.f32 %v2171_v36, %v2206_v49  ;;  %v193_v53 = vmul.f32 %v2173_v37, %v2206_v49  ;;  %v194_v54 = vmul.f32 %v2175_v38, %v2206_v49  ;;  %v2310_v36 = vld [vmem:[#allocation6 + $0x48] sm:$0xff] }
  0x8a   :  { %3357 = vst [vmem:[#allocation46_spill] sm:$0xff] %v2310_v36 }
  0x8b   :  { %v224_v58 = vadd.f32 %v192_v52, %v116_v45  ;;  %v225_v59 = vadd.f32 %v193_v53, %v117_v46  ;;  %v226_v60 = vadd.f32 %v194_v54, %v118_v51  ;;  %v2252_v45 = vld [vmem:[#allocation6 + $0xc8] sm:$0xff]  ;;  %v2254_v46 = vld [vmem:[#allocation6 + $0xd0] sm:$0xff]  ;;  %v2256_v51 = vld [vmem:[#allocation6 + $0xd8] sm:$0xff] }
  0x8c   :  { %3339 = vst [vmem:[#allocation28_spill] sm:$0xff] %v2252_v45  ;;  %501 = vmatpush.msra.mxu1 %v2252_v45  ;;  %521 = vmatpush.msra.mxu2 %v2254_v46 }
  0x8d   :  { %v266_v13 = vadd.f32 %v2188_v42, %v224_v58  ;;  %v267_v14 = vadd.f32 %v2201_v47, %v225_v59  ;;  %v268_v15 = vadd.f32 %v2204_v48, %v226_v60  ;;  %3340 = vst [vmem:[#allocation29_spill] sm:$0xff] %v2254_v46  ;;  %v183_v58 = vperm.slane %v2099_v6, 7  ;;  %v55_v59 = vld [vmem:[%s3148_s0 + $0x8] sm:$0xff]  ;;  %541 = vmatpush.msra.mxu3 %v2256_v51  ;;  %v2284_v48 = vld [vmem:[#allocation6 + $0x90] sm:$0xff] }
  0x8e   :  { %3341 = vst [vmem:[#allocation30_spill] sm:$0xff] %v2256_v51  ;;  %v2266_v60 = vld [vmem:[#allocation6 + $0xa0] sm:$0xff]  ;;  %70 = vperm.xlu1 %1737, %v55_v59   ;;  %v2298_v42 = vld [vmem:[#allocation6 + $0x70] sm:$0xff] }
  0x8f   :  { %v1698_v52 = vmul.f32 -1.442695, %v266_v13  ;;  %v1699_v53 = vmul.f32 -1.442695, %v267_v14  ;;  %v1700_v54 = vmul.f32 -1.442695, %v268_v15  ;;  %482 = vmatpush.msra.mxu0 %v2266_v60  ;;  %542 = vmatpush.msra.mxu3 %v2277_v0 }
  0x90   :  { %3342 = vst [vmem:[#allocation31_spill] sm:$0xff] %v2266_v60  ;;  %v2270_v13 = vld [vmem:[#allocation6 + $0xa8] sm:$0xff]  ;;  %v2272_v14 = vld [vmem:[#allocation6 + $0xb0] sm:$0xff]  ;;  %v107_v15 = vperm.slane %v2099_v6, 6  ;;  %v2286_v47 = vperm.slane %v183_v58, 1  ;;  %v2290_v6 = vld [vmem:[#allocation6 + $0x98] sm:$0xff] }
  0x91   :  { %1749 = vpow2.f32 %v1698_v52  ;;  %3343 = vst [vmem:[#allocation32_spill] sm:$0xff] %v2270_v13  ;;  %v2282_v52 = vld [vmem:[#allocation6 + $0x88] sm:$0xff]  ;;  %502 = vmatpush.msra.mxu1 %v2270_v13  ;;  %522 = vmatpush.msra.mxu2 %v2272_v14  ;;  %v2304_v58 = vld [vmem:[#allocation6 + $0x78] sm:$0xff] }
  0x92   :  { %3344 = vst [vmem:[#allocation33_spill] sm:$0xff] %v2272_v14  ;;  %1751 = vpow2.f32 %v1699_v53  ;;  %v2292_v53 = vld [vmem:[#allocation6 + $0x60] sm:$0xff]  ;;  %483 = vmatpush.msra.mxu0 %v2279_v2  ;;  %v2300_v38 = vperm.slane %v107_v15, 0  ;;  %543 = vmatpush.msra.mxu3 %v2290_v6  ;;  %v195_v15 = vmul.f32 %v2286_v47, %v2206_v49 }
  0x93   :  { %1753 = vpow2.f32 %v1700_v54  ;;  %3347 = vst [vmem:[#allocation36_spill] sm:$0xff] %v2282_v52  ;;  %v2296_v54 = vld [vmem:[#allocation6 + $0x68] sm:$0xff]  ;;  %503 = vmatpush.msra.mxu1 %v2282_v52  ;;  %523 = vmatpush.msra.mxu2 %v2284_v48 }
  0x94   :  { %3348 = vst [vmem:[#allocation37_spill] sm:$0xff] %v2284_v48  ;;  %484 = vmatpush.msra.mxu0 %v2292_v53  ;;  %v2320_v48 = vld [vmem:[#allocation6 + $0x58] sm:$0xff]  ;;  %544 = vmatpush.msra.mxu3 %v2304_v58  ;;  %v119_v49 = vmul.f32 %v2300_v38, %v2113_v11  ;;  %v2347_v11 = vperm.slane %v2161_v32, 3 }
  0x95   :  { %3349 = vst [vmem:[#allocation38_spill] sm:$0xff] %v2286_v47  ;;  %504 = vmatpush.msra.mxu1 %v2296_v54  ;;  %524 = vmatpush.msra.mxu2 %v2298_v42  ;;  %v2335_v47 = vld [vmem:[#allocation6 + $0x28] sm:$0xff] }
  0x96   :  { %3350 = vst [vmem:[#allocation39_spill] sm:$0xff] %v2290_v6  ;;  %485 = vmatpush.msra.mxu0 %v2306_v35  ;;  %545 = vmatpush.msra.mxu3 %v2320_v48  ;;  %v3363_v35 = vmov 1  }
  0x97   :  { %3351 = vst [vmem:[#allocation40_spill] sm:$0xff] %v2292_v53  ;;  %v1750_v37 = vpop.eup %1749  ;;  %v2326_v53 = vld [vmem:[#allocation6 + $0x20] sm:$0xff]  ;;  %505 = vmatpush.msra.mxu1 %v2310_v36  ;;  %525 = vmatpush.msra.mxu2 %v2312_v31  ;;  %v2351_v31 = vld [vmem:[#allocation6 + $0x8] sm:$0xff]  ;;  %v2353_v36 = vld [vmem:[#allocation6 + $0x10] sm:$0xff] }
  0x98   :  { %3352 = vst [vmem:[#allocation41_spill] sm:$0xff] %v2296_v54  ;;  %v1752_v30 = vpop.eup %1751  ;;  %v2316_v52 = vadd.f32 1.0, %v1750_v37  ;;  %1738 = vset.pattern.permute.xlu1 %v3363_v35  ;;  %486 = vmatpush.msra.mxu0 %v2326_v53  ;;  %v2357_v35 = vld [vmem:[#allocation6 + $0x18] sm:$0xff] }
  0x99   :  { %3353 = vst [vmem:[#allocation42_spill] sm:$0xff] %v2298_v42  ;;  %v1754_v2 = vpop.eup %1753  ;;  %v2322_v6 = vadd.f32 1.0, %v1752_v30  ;;  %v2337_v30 = vld [vmem:[#allocation6 + $0x30] sm:$0xff]  ;;  %153 = vperm.xlu1 %1738, %v55_v59   ;;  %506 = vmatpush.msra.mxu1 %v2335_v47 }
  0x9a   :  { %3354 = vst [vmem:[#allocation43_spill] sm:$0xff] %v2300_v38  ;;  %v2330_v37 = vadd.f32 1.0, %v1754_v2  ;;  %1755 = vrcp.f32 %v2316_v52  ;;  %v2344_v2 = vld [vmem:[#allocation6] sm:$0xff]  ;;  %v227_v38 = vadd.f32 %v195_v15, %v119_v49  ;;  %526 = vmatpush.msra.mxu2 %v2337_v30  ;;  %vm356_vm2 = vweird.f32 %v2316_v52 }
  0x9b   :  { %3355 = vst [vmem:[#allocation44_spill] sm:$0xff] %v2304_v58  ;;  %1757 = vrcp.f32 %v2322_v6  ;;  %v2342_v58 = vld [vmem:[#allocation6 + $0x38] sm:$0xff]  ;;  %487 = vmatpush.msra.mxu0 %v2344_v2  ;;  %507 = vmatpush.msra.mxu1 %v2351_v31  ;;  %vm371_vm4 = vweird.f32 %v2322_v6 }
  0x9c   :  { %3359 = vst [vmem:[#allocation48_spill] sm:$0xff] %v2320_v48  ;;  %1759 = vrcp.f32 %v2330_v37  ;;  %546 = vmatpush.msra.mxu3 %v2342_v58  ;;  %527 = vmatpush.msra.mxu2 %v2353_v36  ;;  %v269_v59 = vadd.f32 %v2347_v11, %v227_v38  ;;  %vm386_vm10 = vweird.f32 %v2330_v37 }
  0x9d   :  { %3360 = vst [vmem:[#allocation49_spill] sm:$0xff] %v2326_v53  ;;  %619 = vmatpush.msrb.mxu0 %v2093_v3  ;;  %639 = vmatpush.msrb.mxu1 %v2095_v4 }
  0x9e   :  { %3361 = vst [vmem:[#allocation50_spill] sm:$0xff] %v2335_v47  ;;  %547 = vmatpush.msra.mxu3 %v2357_v35  ;;  %659 = vmatpush.msrb.mxu2 %v2097_v5  ;;  %1761 = vtanh.f32 %v269_v59  ;;  %v362_v5 = vand.u32 2147483648, %v2316_v52  ;;  %v375_v59 = vand.u32 2147483647, %v2322_v6 }
  0x9f   :  { %3362 = vst [vmem:[#allocation51_spill] sm:$0xff] %v2337_v30  ;;  %620 = vmatpush.msrb.mxu0 %v2107_v8  ;;  %640 = vmatpush.msrb.mxu1 %v2109_v9  ;;  %v360_v8 = vand.u32 2147483647, %v2316_v52 }
  0xa0   :  { %3364 = vst [vmem:[#allocation52_spill] sm:$0xff] %v2342_v58  ;;  %v1756_v32 = vpop.eup %1755  ;;  %679 = vmatpush.msrb.mxu3 %v2103_v7  ;;  %660 = vmatpush.msrb.mxu2 %v2111_v10  ;;  %vm376_vm8 = vcmp.eq.f32.partialorder %v375_v59, 8.507059e+37  ;;  %v392_v59 = vand.u32 2147483648, %v2330_v37 }
  0xa1   :  { %3365 = vst [vmem:[#allocation53_spill] sm:$0xff] %v2344_v2  ;;  %v1758_v15 = vpop.eup %1757  ;;  %v352_v49 = vmul.f32 %v1756_v32, %v2316_v52  ;;  %v330_v2 = vlaneseq  ;;  %621 = vmatpush.msrb.mxu0 %v2123_v16  ;;  %vm357_vm0 = vweird.f32 %v1756_v32  ;;  %641 = vmatpush.msrb.mxu1 %v2125_v17  ;;  %vm361_vm5 = vcmp.eq.f32.partialorder %v360_v8, 8.507059e+37 }
  0xa2   :  { %3366 = vst [vmem:[#allocation54_spill] sm:$0xff] %v2347_v11  ;;  %v2369_v58 = vpop.eup %1759  ;;  %680 = vmatpush.msrb.mxu3 %v2117_v12  ;;  %661 = vmatpush.msrb.mxu2 %v2127_v18  ;;  %vm372_vm1 = vweird.f32 %v1758_v15  ;;  %vm358_vm3 = vmor %vm356_vm2, %vm357_vm0  ;;  %v363_v18 = vor.u32 1.1754944e-38, %v362_v5 }
  0xa3   :  { %3367 = vst [vmem:[#allocation55_spill] sm:$0xff] %v2351_v31  ;;  %v367_v31 = vmul.f32 %v1758_v15, %v2322_v6  ;;  %v353_v38 = vsub.f32 1.0, %v352_v49  ;;  %v382_v11 = vmul.f32 %v2369_v58, %v2330_v37  ;;  %v377_v49 = vand.u32 2147483648, %v2322_v6  ;;  %622 = vmatpush.msrb.mxu0 %v2136_v23  ;;  %642 = vmatpush.msrb.mxu1 %v2138_v24  ;;  %vm373_vm6 = vmor %vm371_vm4, %vm372_vm1 }
  0xa4   :  { %3368 = vst [vmem:[#allocation56_spill] sm:$0xff] %v2353_v36  ;;  %v331_v9 = vand.u32 127, %v330_v2  ;;  %681 = vmatpush.msrb.mxu3 %v2134_v22  ;;  %662 = vmatpush.msrb.mxu2 %v2142_v25  ;;  %v1762_v52 = vpop.eup %1761  ;;  %vm387_vm9 = vweird.f32 %v2369_v58 }
  0xa5   :  { %3369 = vst [vmem:[#allocation57_spill] sm:$0xff] %v2357_v35  ;;  %v368_v4 = vsub.f32 1.0, %v367_v31  ;;  %v354_v3 = vmul.f32 %v1756_v32, %v353_v38  ;;  %v383_v38 = vsub.f32 1.0, %v382_v11  ;;  %623 = vmatpush.msrb.mxu0 %v2146_v27  ;;  %643 = vmatpush.msrb.mxu1 %v2150_v28  ;;  %vm388_vm11 = vmor %vm386_vm10, %vm387_vm9 }
  0xa6   :  { %682 = vmatpush.msrb.mxu3 %v2144_v26  ;;  %663 = vmatpush.msrb.mxu2 %v2152_v29  ;;  %vm332_vm7 = vcmp.lt.s32.totalorder %v331_v9, 64  ;;  %v2041_v9 = vmov 0.0  }
  0xa7   :  { %v369_v10 = vmul.f32 %v1758_v15, %v368_v4  ;;  %v355_v31 = vadd.f32 %v1756_v32, %v354_v3  ;;  %v378_v3 = vor.u32 1.1754944e-38, %v377_v49  ;;  %624 = vmatpush.msrb.mxu0 %v2167_v34  ;;  %v384_v6 = vmul.f32 %v2369_v58, %v383_v38  ;;  %644 = vmatpush.msrb.mxu1 %v2179_v39 }
  0xa8   :  { %683 = vmatpush.msrb.mxu3 %v2165_v33  ;;  %664 = vmatpush.msrb.mxu2 %v2181_v40  ;;  %v390_v38 = vand.u32 2147483647, %v2330_v37 }
  0xa9   :  { %v370_v2 = vadd.f32 %v1758_v15, %v369_v10  ;;  %v359_v4 = vsel %vm358_vm3, %v1756_v32, %v355_v31  ;;  %625 = vmatpush.msrb.mxu0 %v2192_v43  ;;  %645 = vmatpush.msrb.mxu1 %v2194_v44  ;;  %v385_v49 = vadd.f32 %v2369_v58, %v384_v6  ;;  %v3375_v6 = vld [vmem:[#allocation40_spill] sm:$0xff] }
  0xaa   :  { %v364_v11 = vsel %vm361_vm5, %v363_v18, %v359_v4  ;;  %684 = vmatpush.msrb.mxu3 %v2185_v41  ;;  %v1697_v18 = vsel %vm332_vm7, 1.0, %v2041_v9  ;;  %665 = vmatpush.msrb.mxu2 %v2210_v50  ;;  %v393_v4 = vor.u32 1.1754944e-38, %v392_v59  ;;  %vm391_vm12 = vcmp.eq.f32.partialorder %v390_v38, 8.507059e+37  ;;  %v3377_v9 = vld [vmem:[#allocation45_spill] sm:$0xff]  ;;  %v3382_v38 = vld [vmem:[#allocation55_spill] sm:$0xff] }
  0xab   :  { %v374_v5 = vsel %vm373_vm6, %v1758_v15, %v370_v2  ;;  %v398_v8 = vmul.f32 %v1762_v52, %v364_v11  ;;  %626 = vmatpush.msrb.mxu0 %v2223_v56  ;;  %646 = vmatpush.msrb.mxu1 %v2227_v57  ;;  %v389_v2 = vsel %vm388_vm11, %v2369_v58, %v385_v49  ;;  %v3371_v52 = vld [vmem:[#allocation35_spill] sm:$0xff]  ;;  %v3372_v11 = vld [vmem:[#allocation36_spill] sm:$0xff]  ;;  %v3381_v59 = vld [vmem:[#allocation53_spill] sm:$0xff] }
  0xac   :  { %v379_v10 = vsel %vm376_vm8, %v378_v3, %v374_v5  ;;  %685 = vmatpush.msrb.mxu3 %v2221_v55  ;;  %666 = vmatpush.msrb.mxu2 %v2230_v61  ;;  %v394_v3 = vsel %vm391_vm12, %v393_v4, %v389_v2  ;;  %v3373_v5 = vld [vmem:[#allocation37_spill] sm:$0xff]  ;;  %v3379_v49 = vld [vmem:[#allocation47_spill] sm:$0xff]  ;;  %v3383_v2 = vmov 0   ;;  %v3384_v4 = vld [vmem:[#allocation12_spill] sm:$0xff] }
  0xad   :  { %v397_v32 = vmul.f32 0.0, %v379_v10  ;;  %627 = vmatpush.msrb.mxu0 %v2236_v63  ;;  %647 = vmatpush.msrb.mxu1 %v2238_v1  ;;  %v3374_v10 = vld [vmem:[#allocation39_spill] sm:$0xff] }
  0xae   :  { %686 = vmatpush.msrb.mxu3 %v2232_v62  ;;  %667 = vmatpush.msrb.mxu2 %v2244_v19 }
  0xaf   :  { %v399_v15 = vadd.f32 %v398_v8, %v397_v32  ;;  %628 = vmatpush.msrb.mxu0 %v2248_v21  ;;  %648 = vmatpush.msrb.mxu1 %v2252_v45  ;;  %v3376_v32 = vld [vmem:[#allocation44_spill] sm:$0xff] }
  0xb0   :  { %687 = vmatpush.msrb.mxu3 %v2246_v20  ;;  %668 = vmatpush.msrb.mxu2 %v2254_v46 }
  0xb1   :  { %1763 = vtanh.f32 %v399_v15  ;;  %v2414_v31 = vmul.f32 %v1697_v18, %v399_v15  ;;  %629 = vmatpush.msrb.mxu0 %v2266_v60  ;;  %649 = vmatpush.msrb.mxu1 %v2270_v13  ;;  %v3378_v15 = vld [vmem:[#allocation46_spill] sm:$0xff] }
  0xb2   :  { %688 = vmatpush.msrb.mxu3 %v2256_v51  ;;  %669 = vmatpush.msrb.mxu2 %v2272_v14 }
  0xb3   :  { %3370 = vst [vmem:[#allocation58_spill] sm:$0xff] %v2414_v31  ;;  %630 = vmatpush.msrb.mxu0 %v3371_v52  ;;  %650 = vmatpush.msrb.mxu1 %v3372_v11  ;;  %v3389_v31 = vld [vmem:[#allocation17_spill] sm:$0xff] }
  0xb4   :  { %689 = vmatpush.msrb.mxu3 %v2277_v0  ;;  %670 = vmatpush.msrb.mxu2 %v3373_v5 }
  0xb5   :  { %631 = vmatpush.msrb.mxu0 %v3375_v6  ;;  %651 = vmatpush.msrb.mxu1 %v2296_v54 }
  0xb6   :  { %690 = vmatpush.msrb.mxu3 %v3374_v10  ;;  %671 = vmatpush.msrb.mxu2 %v2298_v42 }
  0xb7   :  { %v1764_v37 = vpop.eup %1763  ;;  %632 = vmatpush.msrb.mxu0 %v3377_v9  ;;  %652 = vmatpush.msrb.mxu1 %v3378_v15 }
  0xb8   :  { %v401_v58 = vmul.f32 %v1764_v37, %v394_v3  ;;  %691 = vmatpush.msrb.mxu3 %v3376_v32  ;;  %672 = vmatpush.msrb.mxu2 %v3379_v49  ;;  %v3385_v37 = vld [vmem:[#allocation13_spill] sm:$0xff]  ;;  %v3386_v3 = vld [vmem:[#allocation14_spill] sm:$0xff] }
  0xb9   :  { %633 = vmatpush.msrb.mxu0 %v2326_v53  ;;  %653 = vmatpush.msrb.mxu1 %v2335_v47 }
  0xba   :  { %v402_v8 = vmul.f32 %v1697_v18, %v401_v58  ;;  %692 = vmatpush.msrb.mxu3 %v2320_v48  ;;  %673 = vmatpush.msrb.mxu2 %v2337_v30  ;;  %v3380_v18 = vld [vmem:[#allocation52_spill] sm:$0xff]  ;;  %v3387_v58 = vld [vmem:[#allocation15_spill] sm:$0xff] }
  0xbb   :  { %634 = vmatpush.msrb.mxu0 %v3381_v59  ;;  %654 = vmatpush.msrb.mxu1 %v3382_v38 }
  0xbc   :  { %488 = vmatmul.f32.vlgmr.msra.gmra.mxu0 %v402_v8  ;;  %508 = vmatmul.f32.vlgmr.msra.gmra.mxu1 %v402_v8 }
  0xbd   :  { %528 = vmatmul.f32.vlgmr.msra.gmra.mxu2 %v402_v8  ;;  %548 = vmatmul.f32.vlgmr.msra.gmra.mxu3 %v402_v8  ;;  %v3388_v8 = vld [vmem:[#allocation16_spill] sm:$0xff] }
  0xbe   :  { %693 = vmatpush.msrb.mxu3 %v3380_v18  ;;  %674 = vmatpush.msrb.mxu2 %v2353_v36 }
  0xbf   :  { %1741 = vset.pattern.permute.xlu1 %v3383_v2  ;;  %766 = vmatpush.msra.mxu0 %v3384_v4  ;;  %v3390_v2 = vld [vmem:[#allocation18_spill] sm:$0xff] }
  0xc0   :  { %694 = vmatpush.msrb.mxu3 %v2357_v35  ;;  %786 = vmatpush.msra.mxu1 %v3385_v37 }
  0xc1   :  { %806 = vmatpush.msra.mxu2 %v3386_v3  ;;  %767 = vmatpush.msra.mxu0 %v3387_v58 }
  0xc2   :  { %826 = vmatpush.msra.mxu3 %v2103_v7  ;;  %787 = vmatpush.msra.mxu1 %v3388_v8 }
  0xc3   :  { %807 = vmatpush.msra.mxu2 %v3389_v31  ;;  %768 = vmatpush.msra.mxu0 %v2123_v16 }
  0xc4   :  { %827 = vmatpush.msra.mxu3 %v2117_v12  ;;  %788 = vmatpush.msra.mxu1 %v2125_v17 }
  0xc5   :  { %808 = vmatpush.msra.mxu2 %v3390_v2  ;;  %769 = vmatpush.msra.mxu0 %v2136_v23 }
  0xc6   :  { %828 = vmatpush.msra.mxu3 %v2134_v22  ;;  %789 = vmatpush.msra.mxu1 %v2138_v24 }
  0xc7   :  { %809 = vmatpush.msra.mxu2 %v2142_v25  ;;  %770 = vmatpush.msra.mxu0 %v2146_v27 }
  0xc8   :  { %829 = vmatpush.msra.mxu3 %v2144_v26  ;;  %790 = vmatpush.msra.mxu1 %v2150_v28 }
  0xc9   :  { %810 = vmatpush.msra.mxu2 %v2152_v29  ;;  %771 = vmatpush.msra.mxu0 %v2167_v34 }
  0xca   :  { %830 = vmatpush.msra.mxu3 %v2165_v33  ;;  %791 = vmatpush.msra.mxu1 %v2179_v39 }
  0xcb   :  { %811 = vmatpush.msra.mxu2 %v2181_v40  ;;  %772 = vmatpush.msra.mxu0 %v2192_v43 }
  0xcc   :  { %831 = vmatpush.msra.mxu3 %v2185_v41  ;;  %792 = vmatpush.msra.mxu1 %v2194_v44 }
  0xcd   :  { %812 = vmatpush.msra.mxu2 %v2210_v50  ;;  %773 = vmatpush.msra.mxu0 %v2223_v56 }
  0xce   :  { %832 = vmatpush.msra.mxu3 %v2221_v55  ;;  %793 = vmatpush.msra.mxu1 %v2227_v57 }
  0xcf   :  { %813 = vmatpush.msra.mxu2 %v2230_v61  ;;  %774 = vmatpush.msra.mxu0 %v2236_v63 }
  0xd0   :  { %833 = vmatpush.msra.mxu3 %v2232_v62  ;;  %794 = vmatpush.msra.mxu1 %v2238_v1 }
  0xd1   :  { %814 = vmatpush.msra.mxu2 %v2244_v19  ;;  %775 = vmatpush.msra.mxu0 %v2248_v21 }
  0xd2   :  { %834 = vmatpush.msra.mxu3 %v2246_v20  ;;  %795 = vmatpush.msra.mxu1 %v2252_v45 }
  0xd3   :  { %815 = vmatpush.msra.mxu2 %v2254_v46  ;;  %776 = vmatpush.msra.mxu0 %v2266_v60  ;;  %v3404_v46 = vld [vmem:[#allocation58_spill] sm:$0xff] }
  0xd4   :  { %835 = vmatpush.msra.mxu3 %v2256_v51  ;;  %796 = vmatpush.msra.mxu1 %v2270_v13 }
  0xd5   :  { %816 = vmatpush.msra.mxu2 %v2272_v14  ;;  %777 = vmatpush.msra.mxu0 %v3371_v52  ;;  %v3398_v52 = vld [vmem:[#allocation26_spill] sm:$0xff] }
  0xd6   :  { %836 = vmatpush.msra.mxu3 %v2277_v0  ;;  %797 = vmatpush.msra.mxu1 %v3372_v11  ;;  %v3397_v11 = vld [vmem:[#allocation25_spill] sm:$0xff] }
  0xd7   :  { %817 = vmatpush.msra.mxu2 %v3373_v5  ;;  %778 = vmatpush.msra.mxu0 %v3375_v6  ;;  %v3396_v5 = vld [vmem:[#allocation24_spill] sm:$0xff] }
  0xd8   :  { %837 = vmatpush.msra.mxu3 %v3374_v10  ;;  %798 = vmatpush.msra.mxu1 %v2296_v54  ;;  %v3394_v54 = vld [vmem:[#allocation23_spill] sm:$0xff]  ;;  %v3395_v10 = vld [vmem:[#allocation21_spill] sm:$0xff] }
  0xd9   :  { %818 = vmatpush.msra.mxu2 %v2298_v42  ;;  %779 = vmatpush.msra.mxu0 %v3377_v9  ;;  %v3391_v9 = vld [vmem:[#allocation19_spill] sm:$0xff]  ;;  %v3393_v42 = vld [vmem:[#allocation22_spill] sm:$0xff] }
  0xda   :  { %838 = vmatpush.msra.mxu3 %v3376_v32  ;;  %799 = vmatpush.msra.mxu1 %v3378_v15  ;;  %v3392_v32 = vld [vmem:[#allocation20_spill] sm:$0xff] }
  0xdb   :  { %819 = vmatpush.msra.mxu2 %v3379_v49  ;;  %780 = vmatpush.msra.mxu0 %v2326_v53 }
  0xdc   :  { %839 = vmatpush.msra.mxu3 %v2320_v48  ;;  %800 = vmatpush.msra.mxu1 %v2335_v47 }
  0xdd   :  { %820 = vmatpush.msra.mxu2 %v2337_v30  ;;  %781 = vmatpush.msra.mxu0 %v3381_v59 }
  0xde   :  { %840 = vmatpush.msra.mxu3 %v3380_v18  ;;  %801 = vmatpush.msra.mxu1 %v3382_v38 }
  0xdf   :  { %821 = vmatpush.msra.mxu2 %v2353_v36 }
  0xe0   :  { %841 = vmatpush.msra.mxu3 %v2357_v35 }
 0x100   :  { %v71_v15 = vpop.permute.xlu1 %70 }
 0x101   :  { %v120_v48 = vmul.f32 %v3391_v9, %v71_v15  ;;  %v121_v53 = vmul.f32 %v3392_v32, %v71_v15  ;;  %v122_v59 = vmul.f32 %v3395_v10, %v71_v15 }
 0x10b   :  { %v154_v49 = vpop.permute.xlu1 %153 }
 0x10c   :  { %v196_v47 = vmul.f32 %v3393_v42, %v154_v49  ;;  %v197_v30 = vmul.f32 %v3394_v54, %v154_v49  ;;  %v198_v38 = vmul.f32 %v3396_v5, %v154_v49  ;;  %v3399_v54 = vld [vmem:[#allocation27_spill] sm:$0xff]  ;;  %v3401_v5 = vld [vmem:[#allocation38_spill] sm:$0xff] }
 0x10d   :  { %v199_v42 = vmul.f32 %v3401_v5, %v154_v49 }
 0x10e   :  { %v228_v6 = vadd.f32 %v196_v47, %v120_v48  ;;  %v229_v18 = vadd.f32 %v197_v30, %v121_v53  ;;  %v230_v60 = vadd.f32 %v198_v38, %v122_v59  ;;  %v3400_v30 = vld [vmem:[#allocation43_spill] sm:$0xff]  ;;  %v3403_v38 = vmov 1  }
 0x10f   :  { %v123_v10 = vmul.f32 %v3400_v30, %v71_v15 }
 0x110   :  { %v270_v36 = vadd.f32 %v3397_v11, %v228_v6  ;;  %v271_v35 = vadd.f32 %v3398_v52, %v229_v18  ;;  %v272_v47 = vadd.f32 %v3399_v54, %v230_v60 }
 0x139   :  { %v489_v0 = vpop.f32.mrf.mxu0  ;;  %v509_v14 = vpop.f32.mrf.mxu1 }
 0x13a   :  { %v490_v13 = vadd.f32 %v489_v0, %v270_v36  ;;  %v510_v9 = vadd.f32 %v509_v14, %v271_v35  ;;  %v231_v35 = vadd.f32 %v199_v42, %v123_v10  ;;  %v57_v36 = vld [vmem:[%s3148_s0 + $0x18] sm:$0xff]  ;;  %v3402_v14 = vld [vmem:[#allocation54_spill] sm:$0xff] }
 0x13b   :  { %80 = vperm.xlu1 %1741, %v57_v36  }
 0x13c   :  { %v1701_v32 = vmul.f32 -1.442695, %v490_v13  ;;  %v1702_v51 = vmul.f32 -1.442695, %v510_v9 }
 0x13e   :  { %1765 = vpow2.f32 %v1701_v32  ;;  %v273_v32 = vadd.f32 %v3402_v14, %v231_v35 }
 0x13f   :  { %1767 = vpow2.f32 %v1702_v51  ;;  %v56_v51 = vld [vmem:[%s3148_s0 + $0x10] sm:$0xff] }
 0x140   :  { %v529_v48 = vpop.f32.mrf.mxu2  ;;  %75 = vperm.xlu2 %1739, %v56_v51   ;;  %v549_v60 = vpop.f32.mrf.mxu3 }
 0x141   :  { %v530_v53 = vadd.f32 %v529_v48, %v272_v47  ;;  %v550_v15 = vadd.f32 %v549_v60, %v273_v32 }
 0x143   :  { %v1703_v6 = vmul.f32 -1.442695, %v530_v53  ;;  %1743 = vset.pattern.permute.xlu1 %v3403_v38 }
 0x144   :  { %v1766_v11 = vpop.eup %1765 }
 0x145   :  { %v1768_v18 = vpop.eup %1767  ;;  %v561_v52 = vadd.f32 1.0, %v1766_v11  ;;  %1769 = vpow2.f32 %v1703_v6 }
 0x146   :  { %v562_v0 = vadd.f32 1.0, %v1768_v18 }
 0x147   :  { %1771 = vrcp.f32 %v561_v52  ;;  %v575_v48 = vand.u32 2147483648, %v561_v52  ;;  %v573_v18 = vand.u32 2147483647, %v561_v52  ;;  %vm569_vm15 = vweird.f32 %v561_v52 }
 0x148   :  { %1773 = vrcp.f32 %v562_v0  ;;  %1740 = vset.pattern.permute.xlu2 %v3403_v38  ;;  %v590_v53 = vand.u32 2147483648, %v562_v0  ;;  %v588_v60 = vand.u32 2147483647, %v562_v0  ;;  %vm584_vm0 = vweird.f32 %v562_v0 }
 0x149   :  { %157 = vperm.xlu2 %1740, %v56_v51   ;;  %v576_v14 = vor.u32 1.1754944e-38, %v575_v48  ;;  %vm574_vm3 = vcmp.eq.f32.partialorder %v573_v18, 8.507059e+37 }
 0x14a   :  { %vm589_vm4 = vcmp.eq.f32.partialorder %v588_v60, 8.507059e+37 }
 0x14b   :  { %v1770_v13 = vpop.eup %1769 }
 0x14c   :  { %v563_v11 = vadd.f32 1.0, %v1770_v13 }
 0x14d   :  { %v1772_v9 = vpop.eup %1771 }
 0x14e   :  { %v1774_v49 = vpop.eup %1773  ;;  %v565_v42 = vmul.f32 %v1772_v9, %v561_v52  ;;  %1775 = vrcp.f32 %v563_v11  ;;  %vm570_vm13 = vweird.f32 %v1772_v9  ;;  %v605_v48 = vand.u32 2147483648, %v563_v11 }
 0x14f   :  { %v580_v10 = vmul.f32 %v1774_v49, %v562_v0  ;;  %1777 = vtanh.f32 %v550_v15  ;;  %vm585_vm14 = vweird.f32 %v1774_v49  ;;  %vm571_vm1 = vmor %vm569_vm15, %vm570_vm13  ;;  %vm599_vm6 = vweird.f32 %v563_v11 }
 0x150   :  { %v566_v59 = vsub.f32 1.0, %v565_v42  ;;  %vm586_vm2 = vmor %vm584_vm0, %vm585_vm14 }
 0x151   :  { %v581_v47 = vsub.f32 1.0, %v580_v10  ;;  %v591_v10 = vor.u32 1.1754944e-38, %v590_v53  ;;  %161 = vperm.xlu2 %1740, %v57_v36   ;;  %v3437_v36 = vld [vmem:[#allocation21_spill] sm:$0xff] }
 0x152   :  { %v567_v6 = vmul.f32 %v1772_v9, %v566_v59 }
 0x153   :  { %v582_v35 = vmul.f32 %v1774_v49, %v581_v47 }
 0x154   :  { %v1776_v13 = vpop.eup %1775  ;;  %v568_v32 = vadd.f32 %v1772_v9, %v567_v6 }
 0x155   :  { %v595_v42 = vmul.f32 %v1776_v13, %v563_v11  ;;  %v583_v5 = vadd.f32 %v1774_v49, %v582_v35  ;;  %v1778_v51 = vpop.eup %1777  ;;  %vm600_vm5 = vweird.f32 %v1776_v13  ;;  %v3439_v35 = vld [vmem:[#allocation25_spill] sm:$0xff] }
 0x156   :  { %v572_v38 = vsel %vm571_vm1, %v1772_v9, %v568_v32  ;;  %v603_v9 = vand.u32 2147483647, %v563_v11  ;;  %vm601_vm7 = vmor %vm599_vm6, %vm600_vm5 }
 0x157   :  { %v596_v15 = vsub.f32 1.0, %v595_v42  ;;  %v577_v59 = vsel %vm574_vm3, %v576_v14, %v572_v38  ;;  %v587_v30 = vsel %vm586_vm2, %v1774_v49, %v583_v5  ;;  %v606_v14 = vor.u32 1.1754944e-38, %v605_v48  ;;  %v3438_v38 = vld [vmem:[#allocation24_spill] sm:$0xff] }
 0x158   :  { %v592_v47 = vsel %vm589_vm4, %v591_v10, %v587_v30  ;;  %v611_v54 = vmul.f32 %v1778_v51, %v577_v59  ;;  %v3405_v5 = vmov 0   ;;  %vm604_vm8 = vcmp.eq.f32.partialorder %v603_v9, 8.507059e+37 }
 0x159   :  { %v610_v45 = vmul.f32 %v592_v47, %v3404_v46  ;;  %v597_v6 = vmul.f32 %v1776_v13, %v596_v15  ;;  %1744 = vset.pattern.permute.xlu2 %v3405_v5 }
 0x15b   :  { %v2538_v52 = vadd.f32 %v611_v54, %v610_v45  ;;  %v598_v0 = vadd.f32 %v1776_v13, %v597_v6  ;;  %v3434_v54 = vld [vmem:[#allocation20_spill] sm:$0xff] }
 0x15d   :  { %1779 = vtanh.f32 %v2538_v52  ;;  %v602_v53 = vsel %vm601_vm7, %v1776_v13, %v598_v0  ;;  %v3440_v13 = vld [vmem:[#allocation26_spill] sm:$0xff]  ;;  %v3441_v0 = vld [vmem:[#allocation27_spill] sm:$0xff] }
 0x15e   :  { %v607_v49 = vsel %vm604_vm8, %v606_v14, %v602_v53  ;;  %v3442_v14 = vld [vmem:[#allocation43_spill] sm:$0xff] }
 0x163   :  { %v1780_v30 = vpop.eup %1779 }
 0x164   :  { %v614_v46 = vmul.f32 %v1780_v30, %v607_v49  ;;  %v3443_v49 = vld [vmem:[#allocation38_spill] sm:$0xff] }
 0x166   :  { %635 = vmatmul.f32.vlgmr.msrb.gmra.mxu0 %v614_v46  ;;  %655 = vmatmul.f32.vlgmr.msrb.gmra.mxu1 %v614_v46 }
 0x167   :  { %675 = vmatmul.f32.vlgmr.msrb.gmra.mxu2 %v614_v46  ;;  %695 = vmatmul.f32.vlgmr.msrb.gmra.mxu3 %v614_v46 }
 0x168   :  { %913 = vmatpush.msrb.mxu0 %v3384_v4  ;;  %933 = vmatpush.msrb.mxu1 %v3385_v37  ;;  %v3436_v37 = vld [vmem:[#allocation23_spill] sm:$0xff] }
 0x169   :  { %953 = vmatpush.msrb.mxu2 %v3386_v3  ;;  %973 = vmatpush.msrb.mxu3 %v2103_v7  ;;  %v3406_v7 = vld [vmem:[#allocation28_spill] sm:$0xff] }
 0x16a   :  { %914 = vmatpush.msrb.mxu0 %v3387_v58  ;;  %934 = vmatpush.msrb.mxu1 %v3388_v8 }
 0x16b   :  { %954 = vmatpush.msrb.mxu2 %v3389_v31  ;;  %974 = vmatpush.msrb.mxu3 %v2117_v12  ;;  %v3407_v12 = vld [vmem:[#allocation29_spill] sm:$0xff] }
 0x16c   :  { %915 = vmatpush.msrb.mxu0 %v2123_v16  ;;  %935 = vmatpush.msrb.mxu1 %v2125_v17  ;;  %v3408_v16 = vld [vmem:[#allocation30_spill] sm:$0xff]  ;;  %v3409_v17 = vld [vmem:[#allocation31_spill] sm:$0xff] }
 0x16d   :  { %955 = vmatpush.msrb.mxu2 %v3390_v2  ;;  %975 = vmatpush.msrb.mxu3 %v2134_v22  ;;  %v3410_v22 = vld [vmem:[#allocation32_spill] sm:$0xff]  ;;  %v3435_v2 = vld [vmem:[#allocation22_spill] sm:$0xff] }
 0x16e   :  { %916 = vmatpush.msrb.mxu0 %v2136_v23  ;;  %936 = vmatpush.msrb.mxu1 %v2138_v24  ;;  %v3411_v23 = vld [vmem:[#allocation33_spill] sm:$0xff]  ;;  %v3412_v24 = vld [vmem:[#allocation34_spill] sm:$0xff] }
 0x16f   :  { %956 = vmatpush.msrb.mxu2 %v2142_v25  ;;  %976 = vmatpush.msrb.mxu3 %v2144_v26  ;;  %v3413_v25 = vld [vmem:[#allocation35_spill] sm:$0xff]  ;;  %v3414_v26 = vld [vmem:[#allocation36_spill] sm:$0xff] }
 0x170   :  { %917 = vmatpush.msrb.mxu0 %v2146_v27  ;;  %937 = vmatpush.msrb.mxu1 %v2150_v28  ;;  %v3415_v27 = vld [vmem:[#allocation37_spill] sm:$0xff]  ;;  %v3416_v28 = vld [vmem:[#allocation39_spill] sm:$0xff] }
 0x171   :  { %957 = vmatpush.msrb.mxu2 %v2152_v29  ;;  %977 = vmatpush.msrb.mxu3 %v2165_v33  ;;  %v3417_v29 = vld [vmem:[#allocation40_spill] sm:$0xff]  ;;  %v3418_v33 = vld [vmem:[#allocation41_spill] sm:$0xff] }
 0x172   :  { %918 = vmatpush.msrb.mxu0 %v2167_v34  ;;  %938 = vmatpush.msrb.mxu1 %v2179_v39  ;;  %v3419_v34 = vld [vmem:[#allocation42_spill] sm:$0xff]  ;;  %v3420_v39 = vld [vmem:[#allocation44_spill] sm:$0xff] }
 0x173   :  { %958 = vmatpush.msrb.mxu2 %v2181_v40  ;;  %978 = vmatpush.msrb.mxu3 %v2185_v41  ;;  %v3421_v40 = vld [vmem:[#allocation45_spill] sm:$0xff]  ;;  %v3422_v41 = vld [vmem:[#allocation46_spill] sm:$0xff] }
 0x174   :  { %919 = vmatpush.msrb.mxu0 %v2192_v43  ;;  %939 = vmatpush.msrb.mxu1 %v2194_v44  ;;  %v3423_v43 = vld [vmem:[#allocation47_spill] sm:$0xff]  ;;  %v3424_v44 = vld [vmem:[#allocation48_spill] sm:$0xff] }
 0x175   :  { %959 = vmatpush.msrb.mxu2 %v2210_v50  ;;  %979 = vmatpush.msrb.mxu3 %v2221_v55  ;;  %v3425_v50 = vld [vmem:[#allocation49_spill] sm:$0xff]  ;;  %v3426_v55 = vld [vmem:[#allocation50_spill] sm:$0xff] }
 0x176   :  { %920 = vmatpush.msrb.mxu0 %v2223_v56  ;;  %940 = vmatpush.msrb.mxu1 %v2227_v57  ;;  %v3427_v56 = vld [vmem:[#allocation51_spill] sm:$0xff]  ;;  %v3428_v57 = vld [vmem:[#allocation52_spill] sm:$0xff] }
 0x177   :  { %960 = vmatpush.msrb.mxu2 %v2230_v61  ;;  %980 = vmatpush.msrb.mxu3 %v2232_v62  ;;  %v3429_v61 = vld [vmem:[#allocation53_spill] sm:$0xff]  ;;  %v3430_v62 = vld [vmem:[#allocation55_spill] sm:$0xff] }
 0x178   :  { %921 = vmatpush.msrb.mxu0 %v2236_v63  ;;  %941 = vmatpush.msrb.mxu1 %v2238_v1  ;;  %v3431_v63 = vld [vmem:[#allocation56_spill] sm:$0xff]  ;;  %v3432_v1 = vld [vmem:[#allocation57_spill] sm:$0xff] }
 0x179   :  { %961 = vmatpush.msrb.mxu2 %v2244_v19  ;;  %981 = vmatpush.msrb.mxu3 %v2246_v20 }
 0x17a   :  { %922 = vmatpush.msrb.mxu0 %v2248_v21  ;;  %942 = vmatpush.msrb.mxu1 %v3406_v7  ;;  %v3433_v21 = vld [vmem:[#allocation19_spill] sm:$0xff] }
 0x17b   :  { %962 = vmatpush.msrb.mxu2 %v3407_v12  ;;  %982 = vmatpush.msrb.mxu3 %v3408_v16 }
 0x17c   :  { %923 = vmatpush.msrb.mxu0 %v3409_v17  ;;  %943 = vmatpush.msrb.mxu1 %v3410_v22 }
 0x17d   :  { %963 = vmatpush.msrb.mxu2 %v3411_v23  ;;  %983 = vmatpush.msrb.mxu3 %v3412_v24 }
 0x17e   :  { %924 = vmatpush.msrb.mxu0 %v3413_v25  ;;  %944 = vmatpush.msrb.mxu1 %v3414_v26  ;;  %v3444_v26 = vld [vmem:[#allocation54_spill] sm:$0xff] }
 0x17f   :  { %964 = vmatpush.msrb.mxu2 %v3415_v27  ;;  %984 = vmatpush.msrb.mxu3 %v3416_v28 }
 0x180   :  { %925 = vmatpush.msrb.mxu0 %v3417_v29  ;;  %945 = vmatpush.msrb.mxu1 %v3418_v33 }
 0x181   :  { %965 = vmatpush.msrb.mxu2 %v3419_v34  ;;  %985 = vmatpush.msrb.mxu3 %v3420_v39 }
 0x182   :  { %926 = vmatpush.msrb.mxu0 %v3421_v40  ;;  %946 = vmatpush.msrb.mxu1 %v3422_v41 }
 0x183   :  { %966 = vmatpush.msrb.mxu2 %v3423_v43  ;;  %986 = vmatpush.msrb.mxu3 %v3424_v44 }
 0x184   :  { %927 = vmatpush.msrb.mxu0 %v3425_v50  ;;  %947 = vmatpush.msrb.mxu1 %v3426_v55 }
 0x185   :  { %967 = vmatpush.msrb.mxu2 %v3427_v56  ;;  %987 = vmatpush.msrb.mxu3 %v3428_v57 }
 0x186   :  { %928 = vmatpush.msrb.mxu0 %v3429_v61  ;;  %948 = vmatpush.msrb.mxu1 %v3430_v62 }
 0x187   :  { %968 = vmatpush.msrb.mxu2 %v3431_v63  ;;  %988 = vmatpush.msrb.mxu3 %v3432_v1 }
 0x19a   :  { %v76_v19 = vpop.permute.xlu2 %75 }
 0x19b   :  { %v124_v45 = vmul.f32 %v3433_v21, %v76_v19  ;;  %v125_v31 = vmul.f32 %v3434_v54, %v76_v19  ;;  %v126_v11 = vmul.f32 %v3437_v36, %v76_v19  ;;  %v127_v30 = vmul.f32 %v3442_v14, %v76_v19 }
 0x1a3   :  { %v158_v20 = vpop.permute.xlu2 %157 }
 0x1a4   :  { %v200_v4 = vmul.f32 %v3435_v2, %v158_v20  ;;  %v201_v3 = vmul.f32 %v3436_v37, %v158_v20  ;;  %v202_v18 = vmul.f32 %v3438_v38, %v158_v20  ;;  %v203_v46 = vmul.f32 %v3443_v49, %v158_v20 }
 0x1a6   :  { %v232_v58 = vadd.f32 %v200_v4, %v124_v45  ;;  %v233_v8 = vadd.f32 %v201_v3, %v125_v31  ;;  %v234_v59 = vadd.f32 %v202_v18, %v126_v11  ;;  %v235_v23 = vadd.f32 %v203_v46, %v127_v30  ;;  %v2628_v30 = vld [vmem:[#allocation6 + $0x1f0] sm:$0xff]  ;;  %v2631_v46 = vld [vmem:[#allocation6 + $0x1f8] sm:$0xff] }
 0x1a8   :  { %v274_v60 = vadd.f32 %v3439_v35, %v232_v58  ;;  %v275_v32 = vadd.f32 %v3440_v13, %v233_v8  ;;  %v276_v48 = vadd.f32 %v3441_v0, %v234_v59  ;;  %v277_v27 = vadd.f32 %v3444_v26, %v235_v23  ;;  %v2649_v23 = vld [vmem:[#allocation6 + $0x1a8] sm:$0xff] }
 0x1e3   :  { %v636_v42 = vpop.f32.mrf.mxu0  ;;  %v656_v10 = vpop.f32.mrf.mxu1 }
 0x1e4   :  { %v637_v51 = vadd.f32 %v636_v42, %v274_v60  ;;  %v657_v15 = vadd.f32 %v656_v10, %v275_v32 }
 0x1e6   :  { %v1704_v47 = vmul.f32 -1.442695, %v637_v51  ;;  %v1705_v6 = vmul.f32 -1.442695, %v657_v15 }
 0x1e8   :  { %1781 = vpow2.f32 %v1704_v47 }
 0x1e9   :  { %1783 = vpow2.f32 %v1705_v6 }
 0x1ea   :  { %v676_v9 = vpop.f32.mrf.mxu2  ;;  %v696_v24 = vpop.f32.mrf.mxu3 }
 0x1eb   :  { %v677_v53 = vadd.f32 %v676_v9, %v276_v48  ;;  %v697_v33 = vadd.f32 %v696_v24, %v277_v27  ;;  %v2652_v24 = vld [vmem:[#allocation6 + $0x1b0] sm:$0xff]  ;;  %v2658_v27 = vld [vmem:[#allocation6 + $0x180] sm:$0xff] }
 0x1ed   :  { %v1706_v7 = vmul.f32 -1.442695, %v677_v53  ;;  %v2625_v53 = vld [vmem:[#allocation6 + $0x1e8] sm:$0xff] }
 0x1ee   :  { %v1782_v12 = vpop.eup %1781 }
 0x1ef   :  { %v1784_v16 = vpop.eup %1783  ;;  %v708_v17 = vadd.f32 1.0, %v1782_v12  ;;  %1785 = vpow2.f32 %v1706_v7  ;;  %v2634_v7 = vld [vmem:[#allocation6 + $0x1c0] sm:$0xff]  ;;  %v2637_v12 = vld [vmem:[#allocation6 + $0x1c8] sm:$0xff] }
 0x1f0   :  { %v709_v22 = vadd.f32 1.0, %v1784_v16  ;;  %v2640_v16 = vld [vmem:[#allocation6 + $0x1d0] sm:$0xff] }
 0x1f1   :  { %1787 = vrcp.f32 %v708_v17  ;;  %v722_v44 = vand.u32 2147483648, %v708_v17  ;;  %v720_v56 = vand.u32 2147483647, %v708_v17  ;;  %vm716_vm11 = vweird.f32 %v708_v17 }
 0x1f2   :  { %1789 = vrcp.f32 %v709_v22  ;;  %v737_v50 = vand.u32 2147483648, %v709_v22  ;;  %v735_v61 = vand.u32 2147483647, %v709_v22  ;;  %vm731_vm12 = vweird.f32 %v709_v22 }
 0x1f3   :  { %v723_v19 = vor.u32 1.1754944e-38, %v722_v44  ;;  %vm721_vm15 = vcmp.eq.f32.partialorder %v720_v56, 8.507059e+37  ;;  %v2685_v44 = vld [vmem:[#allocation6 + $0x148] sm:$0xff]  ;;  %v2694_v56 = vld [vmem:[#allocation6 + $0x120] sm:$0xff] }
 0x1f4   :  { %v738_v45 = vor.u32 1.1754944e-38, %v737_v50  ;;  %vm736_vm0 = vcmp.eq.f32.partialorder %v735_v61, 8.507059e+37  ;;  %v2688_v50 = vld [vmem:[#allocation6 + $0x150] sm:$0xff] }
 0x1f5   :  { %v1786_v25 = vpop.eup %1785  ;;  %v2700_v61 = vld [vmem:[#allocation6 + $0x130] sm:$0xff] }
 0x1f6   :  { %v710_v28 = vadd.f32 1.0, %v1786_v25  ;;  %v2655_v25 = vld [vmem:[#allocation6 + $0x1b8] sm:$0xff] }
 0x1f7   :  { %v1788_v29 = vpop.eup %1787 }
 0x1f8   :  { %v1790_v34 = vpop.eup %1789  ;;  %v712_v39 = vmul.f32 %v1788_v29, %v708_v17  ;;  %1791 = vrcp.f32 %v710_v28  ;;  %vm717_vm9 = vweird.f32 %v1788_v29  ;;  %v752_v51 = vand.u32 2147483648, %v710_v28  ;;  %v2643_v17 = vld [vmem:[#allocation6 + $0x1d8] sm:$0xff] }
 0x1f9   :  { %v727_v40 = vmul.f32 %v1790_v34, %v709_v22  ;;  %1793 = vtanh.f32 %v697_v33  ;;  %vm732_vm10 = vweird.f32 %v1790_v34  ;;  %vm718_vm13 = vmor %vm716_vm11, %vm717_vm9  ;;  %vm746_vm2 = vweird.f32 %v710_v28  ;;  %v2646_v22 = vld [vmem:[#allocation6 + $0x1a0] sm:$0xff]  ;;  %v2667_v33 = vld [vmem:[#allocation6 + $0x198] sm:$0xff] }
 0x1fa   :  { %v713_v41 = vsub.f32 1.0, %v712_v39  ;;  %vm733_vm14 = vmor %vm731_vm12, %vm732_vm10  ;;  %v750_v15 = vand.u32 2147483647, %v710_v28  ;;  %v753_v47 = vor.u32 1.1754944e-38, %v752_v51  ;;  %v2673_v39 = vld [vmem:[#allocation6 + $0x168] sm:$0xff]  ;;  %v2751_v51 = vld [vmem:[#allocation6 + $0xb8] sm:$0xff] }
 0x1fb   :  { %v728_v43 = vsub.f32 1.0, %v727_v40  ;;  %v2676_v40 = vld [vmem:[#allocation6 + $0x170] sm:$0xff]  ;;  %3455 = vst [vmem:[#allocation30_spill] sm:$0xff] %v2751_v51 }
 0x1fc   :  { %v714_v55 = vmul.f32 %v1788_v29, %v713_v41  ;;  %vm751_vm4 = vcmp.eq.f32.partialorder %v750_v15, 8.507059e+37  ;;  %v2679_v41 = vld [vmem:[#allocation6 + $0x178] sm:$0xff]  ;;  %v2754_v15 = vld [vmem:[#allocation6 + $0x80] sm:$0xff] }
 0x1fd   :  { %v729_v57 = vmul.f32 %v1790_v34, %v728_v43  ;;  %v2682_v43 = vld [vmem:[#allocation6 + $0x140] sm:$0xff]  ;;  %3456 = vst [vmem:[#allocation31_spill] sm:$0xff] %v2754_v15 }
 0x1fe   :  { %v1792_v62 = vpop.eup %1791  ;;  %v715_v63 = vadd.f32 %v1788_v29, %v714_v55  ;;  %v2691_v55 = vld [vmem:[#allocation6 + $0x158] sm:$0xff] }
 0x1ff   :  { %v742_v1 = vmul.f32 %v1792_v62, %v710_v28  ;;  %v730_v20 = vadd.f32 %v1790_v34, %v729_v57  ;;  %v1794_v4 = vpop.eup %1793  ;;  %vm747_vm1 = vweird.f32 %v1792_v62  ;;  %v2661_v28 = vld [vmem:[#allocation6 + $0x188] sm:$0xff] }
 0x200   :  { %v719_v31 = vsel %vm718_vm13, %v1788_v29, %v715_v63  ;;  %vm748_vm3 = vmor %vm746_vm2, %vm747_vm1  ;;  %v2664_v29 = vld [vmem:[#allocation6 + $0x190] sm:$0xff]  ;;  %v2697_v57 = vld [vmem:[#allocation6 + $0x128] sm:$0xff] }
 0x201   :  { %v743_v3 = vsub.f32 1.0, %v742_v1  ;;  %v724_v58 = vsel %vm721_vm15, %v723_v19, %v719_v31  ;;  %v734_v8 = vsel %vm733_vm14, %v1790_v34, %v730_v20  ;;  %v2670_v34 = vld [vmem:[#allocation6 + $0x160] sm:$0xff]  ;;  %v2709_v1 = vld [vmem:[#allocation6 + $0x108] sm:$0xff]  ;;  %v2712_v19 = vld [vmem:[#allocation6 + $0x110] sm:$0xff] }
 0x202   :  { %v739_v11 = vsel %vm736_vm0, %v738_v45, %v734_v8  ;;  %v758_v18 = vmul.f32 %v1794_v4, %v724_v58  ;;  %v2706_v63 = vld [vmem:[#allocation6 + $0x100] sm:$0xff]  ;;  %v2715_v20 = vld [vmem:[#allocation6 + $0x118] sm:$0xff]  ;;  %v2721_v31 = vld [vmem:[#allocation6 + $0xe8] sm:$0xff] }
 0x203   :  { %v757_v60 = vmul.f32 %v739_v11, %v2538_v52  ;;  %v744_v32 = vmul.f32 %v1792_v62, %v743_v3  ;;  %v2622_v52 = vld [vmem:[#allocation6 + $0x1e0] sm:$0xff]  ;;  %3445 = vst [vmem:[#allocation12_spill] sm:$0xff] %v2721_v31  ;;  %v2724_v4 = vld [vmem:[#allocation6 + $0xf0] sm:$0xff]  ;;  %v2727_v3 = vld [vmem:[#allocation6 + $0xf8] sm:$0xff] }
 0x204   :  { %v2718_v45 = vld [vmem:[#allocation6 + $0xe0] sm:$0xff]  ;;  %3446 = vst [vmem:[#allocation13_spill] sm:$0xff] %v2724_v4  ;;  %v2733_v8 = vld [vmem:[#allocation6 + $0xc8] sm:$0xff]  ;;  %v2736_v11 = vld [vmem:[#allocation6 + $0xd0] sm:$0xff] }
 0x205   :  { %v2619_v42 = vadd.f32 %v758_v18, %v757_v60  ;;  %v745_v10 = vadd.f32 %v1792_v62, %v744_v32  ;;  %3447 = vst [vmem:[#allocation14_spill] sm:$0xff] %v2727_v3  ;;  %v2730_v58 = vld [vmem:[#allocation6 + $0xc0] sm:$0xff]  ;;  %v2739_v18 = vld [vmem:[#allocation6 + $0xd8] sm:$0xff]  ;;  %v2745_v32 = vld [vmem:[#allocation6 + $0xa8] sm:$0xff] }
 0x206   :  { %3448 = vst [vmem:[#allocation15_spill] sm:$0xff] %v2730_v58  ;;  %v2742_v60 = vld [vmem:[#allocation6 + $0xa0] sm:$0xff] }
 0x207   :  { %1795 = vtanh.f32 %v2619_v42  ;;  %v749_v59 = vsel %vm748_vm3, %v1792_v62, %v745_v10  ;;  %v2703_v62 = vld [vmem:[#allocation6 + $0x138] sm:$0xff]  ;;  %3449 = vst [vmem:[#allocation16_spill] sm:$0xff] %v2733_v8  ;;  %v2748_v10 = vld [vmem:[#allocation6 + $0xb0] sm:$0xff] }
 0x208   :  { %v754_v48 = vsel %vm751_vm4, %v753_v47, %v749_v59  ;;  %3450 = vst [vmem:[#allocation17_spill] sm:$0xff] %v2736_v11  ;;  %v2757_v59 = vld [vmem:[#allocation6 + $0x88] sm:$0xff]  ;;  %v2760_v47 = vld [vmem:[#allocation6 + $0x90] sm:$0xff] }
 0x209   :  { %3451 = vst [vmem:[#allocation18_spill] sm:$0xff] %v2739_v18 }
 0x20a   :  { %3452 = vst [vmem:[#allocation58_spill] sm:$0xff] %v2742_v60 }
 0x20b   :  { %3453 = vst [vmem:[#allocation28_spill] sm:$0xff] %v2745_v32 }
 0x20c   :  { %3454 = vst [vmem:[#allocation29_spill] sm:$0xff] %v2748_v10 }
 0x20d   :  { %v1796_v6 = vpop.eup %1795  ;;  %3457 = vst [vmem:[#allocation32_spill] sm:$0xff] %v2757_v59 }
 0x20e   :  { %v761_v9 = vmul.f32 %v1796_v6, %v754_v48  ;;  %3458 = vst [vmem:[#allocation33_spill] sm:$0xff] %v2760_v47  ;;  %v2763_v6 = vld [vmem:[#allocation6 + $0x98] sm:$0xff]  ;;  %v2766_v48 = vld [vmem:[#allocation6 + $0x60] sm:$0xff] }
 0x20f   :  { %3459 = vst [vmem:[#allocation34_spill] sm:$0xff] %v2763_v6 }
 0x210   :  { %782 = vmatmul.f32.vlgmr.msra.gmra.mxu0 %v761_v9  ;;  %802 = vmatmul.f32.vlgmr.msra.gmra.mxu1 %v761_v9  ;;  %3460 = vst [vmem:[#allocation35_spill] sm:$0xff] %v2766_v48 }
 0x211   :  { %822 = vmatmul.f32.vlgmr.msra.gmra.mxu2 %v761_v9  ;;  %842 = vmatmul.f32.vlgmr.msra.gmra.mxu3 %v761_v9  ;;  %v2769_v9 = vld [vmem:[#allocation6 + $0x68] sm:$0xff] }
 0x212   :  { %1060 = vmatpush.msra.mxu0 %v2622_v52  ;;  %1080 = vmatpush.msra.mxu1 %v2625_v53  ;;  %3461 = vst [vmem:[#allocation36_spill] sm:$0xff] %v2769_v9 }
 0x213   :  { %1100 = vmatpush.msra.mxu2 %v2628_v30  ;;  %1120 = vmatpush.msra.mxu3 %v2631_v46 }
 0x214   :  { %1061 = vmatpush.msra.mxu0 %v2634_v7  ;;  %1081 = vmatpush.msra.mxu1 %v2637_v12 }
 0x215   :  { %1101 = vmatpush.msra.mxu2 %v2640_v16  ;;  %1121 = vmatpush.msra.mxu3 %v2643_v17 }
 0x216   :  { %1062 = vmatpush.msra.mxu0 %v2646_v22  ;;  %1082 = vmatpush.msra.mxu1 %v2649_v23 }
 0x217   :  { %1102 = vmatpush.msra.mxu2 %v2652_v24  ;;  %1122 = vmatpush.msra.mxu3 %v2655_v25 }
 0x218   :  { %1063 = vmatpush.msra.mxu0 %v2658_v27  ;;  %1083 = vmatpush.msra.mxu1 %v2661_v28 }
 0x219   :  { %1103 = vmatpush.msra.mxu2 %v2664_v29  ;;  %1123 = vmatpush.msra.mxu3 %v2667_v33 }
 0x21a   :  { %1064 = vmatpush.msra.mxu0 %v2670_v34  ;;  %1084 = vmatpush.msra.mxu1 %v2673_v39 }
 0x21b   :  { %1104 = vmatpush.msra.mxu2 %v2676_v40  ;;  %1124 = vmatpush.msra.mxu3 %v2679_v41 }
 0x21c   :  { %1065 = vmatpush.msra.mxu0 %v2682_v43  ;;  %1085 = vmatpush.msra.mxu1 %v2685_v44 }
 0x21d   :  { %1105 = vmatpush.msra.mxu2 %v2688_v50  ;;  %1125 = vmatpush.msra.mxu3 %v2691_v55 }
 0x21e   :  { %1066 = vmatpush.msra.mxu0 %v2694_v56  ;;  %1086 = vmatpush.msra.mxu1 %v2697_v57 }
 0x21f   :  { %1106 = vmatpush.msra.mxu2 %v2700_v61  ;;  %1126 = vmatpush.msra.mxu3 %v2703_v62 }
 0x220   :  { %1067 = vmatpush.msra.mxu0 %v2706_v63  ;;  %1087 = vmatpush.msra.mxu1 %v2709_v1 }
 0x221   :  { %1107 = vmatpush.msra.mxu2 %v2712_v19  ;;  %1127 = vmatpush.msra.mxu3 %v2715_v20 }
 0x222   :  { %1068 = vmatpush.msra.mxu0 %v2718_v45  ;;  %1088 = vmatpush.msra.mxu1 %v2721_v31 }
 0x223   :  { %1108 = vmatpush.msra.mxu2 %v2724_v4  ;;  %1128 = vmatpush.msra.mxu3 %v2727_v3 }
 0x224   :  { %1069 = vmatpush.msra.mxu0 %v2730_v58  ;;  %1089 = vmatpush.msra.mxu1 %v2733_v8 }
 0x225   :  { %1109 = vmatpush.msra.mxu2 %v2736_v11  ;;  %1129 = vmatpush.msra.mxu3 %v2739_v18 }
 0x226   :  { %1070 = vmatpush.msra.mxu0 %v2742_v60  ;;  %1090 = vmatpush.msra.mxu1 %v2745_v32 }
 0x227   :  { %1110 = vmatpush.msra.mxu2 %v2748_v10  ;;  %1130 = vmatpush.msra.mxu3 %v2751_v51  ;;  %v81_v51 = vpop.permute.xlu1 %80 }
 0x228   :  { %1071 = vmatpush.msra.mxu0 %v2754_v15  ;;  %1091 = vmatpush.msra.mxu1 %v2757_v59  ;;  %v2772_v15 = vld [vmem:[#allocation6 + $0x70] sm:$0xff]  ;;  %v2775_v59 = vld [vmem:[#allocation6 + $0x78] sm:$0xff]  ;;  %v129_v32 = vmul.f32 %v3434_v54, %v81_v51 }
 0x229   :  { %1111 = vmatpush.msra.mxu2 %v2760_v47  ;;  %1131 = vmatpush.msra.mxu3 %v2763_v6  ;;  %3462 = vst [vmem:[#allocation37_spill] sm:$0xff] %v2772_v15  ;;  %v2778_v47 = vld [vmem:[#allocation6 + $0x40] sm:$0xff]  ;;  %v2781_v6 = vld [vmem:[#allocation6 + $0x48] sm:$0xff] }
 0x22a   :  { %1072 = vmatpush.msra.mxu0 %v2766_v48  ;;  %1092 = vmatpush.msra.mxu1 %v2769_v9  ;;  %3463 = vst [vmem:[#allocation39_spill] sm:$0xff] %v2775_v59  ;;  %v2784_v48 = vld [vmem:[#allocation6 + $0x50] sm:$0xff]  ;;  %v2787_v9 = vld [vmem:[#allocation6 + $0x58] sm:$0xff] }
 0x22b   :  { %1112 = vmatpush.msra.mxu2 %v2772_v15  ;;  %1132 = vmatpush.msra.mxu3 %v2775_v59  ;;  %3464 = vst [vmem:[#allocation40_spill] sm:$0xff] %v2778_v47  ;;  %v2790_v15 = vld [vmem:[#allocation6 + $0x20] sm:$0xff]  ;;  %v2793_v59 = vld [vmem:[#allocation6 + $0x28] sm:$0xff] }
 0x22c   :  { %1073 = vmatpush.msra.mxu0 %v2778_v47  ;;  %3465 = vst [vmem:[#allocation41_spill] sm:$0xff] %v2781_v6  ;;  %1093 = vmatpush.msra.mxu1 %v2781_v6  ;;  %v2796_v47 = vld [vmem:[#allocation6 + $0x30] sm:$0xff]  ;;  %v2799_v6 = vld [vmem:[#allocation6 + $0x38] sm:$0xff] }
 0x22d   :  { %3466 = vst [vmem:[#allocation42_spill] sm:$0xff] %v2784_v48  ;;  %1113 = vmatpush.msra.mxu2 %v2784_v48  ;;  %1133 = vmatpush.msra.mxu3 %v2787_v9  ;;  %v2802_v48 = vld [vmem:[#allocation6] sm:$0xff] }
 0x22e   :  { %3467 = vst [vmem:[#allocation44_spill] sm:$0xff] %v2787_v9  ;;  %1074 = vmatpush.msra.mxu0 %v2790_v15  ;;  %1094 = vmatpush.msra.mxu1 %v2793_v59  ;;  %v2805_v9 = vld [vmem:[#allocation6 + $0x8] sm:$0xff] }
 0x22f   :  { %3468 = vst [vmem:[#allocation45_spill] sm:$0xff] %v2790_v15  ;;  %1114 = vmatpush.msra.mxu2 %v2796_v47  ;;  %1134 = vmatpush.msra.mxu3 %v2799_v6  ;;  %v2808_v15 = vld [vmem:[#allocation6 + $0x10] sm:$0xff] }
 0x230   :  { %3469 = vst [vmem:[#allocation46_spill] sm:$0xff] %v2793_v59  ;;  %1075 = vmatpush.msra.mxu0 %v2802_v48  ;;  %1095 = vmatpush.msra.mxu1 %v2805_v9  ;;  %v2811_v59 = vld [vmem:[#allocation6 + $0x18] sm:$0xff] }
 0x231   :  { %3470 = vst [vmem:[#allocation47_spill] sm:$0xff] %v2796_v47  ;;  %1115 = vmatpush.msra.mxu2 %v2808_v15  ;;  %1135 = vmatpush.msra.mxu3 %v2811_v59  ;;  %v162_v47 = vpop.permute.xlu2 %161 }
 0x232   :  { %3471 = vst [vmem:[#allocation48_spill] sm:$0xff] %v2799_v6  ;;  %v204_v6 = vmul.f32 %v3435_v2, %v162_v47  ;;  %v205_v10 = vmul.f32 %v3436_v37, %v162_v47  ;;  %v206_v18 = vmul.f32 %v3438_v38, %v162_v47 }
 0x233   :  { %3472 = vst [vmem:[#allocation49_spill] sm:$0xff] %v2802_v48  ;;  %v128_v48 = vmul.f32 %v3433_v21, %v81_v51 }
 0x234   :  { %3473 = vst [vmem:[#allocation50_spill] sm:$0xff] %v2805_v9  ;;  %v237_v9 = vadd.f32 %v205_v10, %v129_v32 }
 0x235   :  { %3474 = vst [vmem:[#allocation51_spill] sm:$0xff] %v2808_v15  ;;  %v236_v60 = vadd.f32 %v204_v6, %v128_v48  ;;  %v130_v15 = vmul.f32 %v3437_v36, %v81_v51  ;;  %v58_v6 = vld [vmem:[%s3148_s0 + $0x20] sm:$0xff]  ;;  %v207_v48 = vmul.f32 %v3443_v49, %v162_v47 }
 0x236   :  { %3475 = vst [vmem:[#allocation52_spill] sm:$0xff] %v2811_v59  ;;  %v279_v59 = vadd.f32 %v3440_v13, %v237_v9  ;;  %165 = vperm.xlu1 %1743, %v58_v6   ;;  %85 = vperm.xlu0 %1742, %v58_v6  }
 0x237   :  { %v278_v11 = vadd.f32 %v3439_v35, %v236_v60  ;;  %v238_v4 = vadd.f32 %v206_v18, %v130_v15  ;;  %v3476_v15 = vmov 1  }
 0x239   :  { %v280_v32 = vadd.f32 %v3441_v0, %v238_v4 }
 0x23e   :  { %1745 = vset.pattern.permute.xlu0 %v3476_v15 }
 0x28d   :  { %v783_v8 = vpop.f32.mrf.mxu0  ;;  %v803_v58 = vpop.f32.mrf.mxu1 }
 0x28e   :  { %v784_v3 = vadd.f32 %v783_v8, %v278_v11  ;;  %v804_v2 = vadd.f32 %v803_v58, %v279_v59  ;;  %v131_v8 = vmul.f32 %v3442_v14, %v81_v51 }
 0x290   :  { %v1707_v37 = vmul.f32 -1.442695, %v784_v3  ;;  %v1708_v31 = vmul.f32 -1.442695, %v804_v2 }
 0x292   :  { %1797 = vpow2.f32 %v1707_v37  ;;  %v239_v37 = vadd.f32 %v207_v48, %v131_v8 }
 0x293   :  { %1799 = vpow2.f32 %v1708_v31  ;;  %v59_v31 = vld [vmem:[%s3148_s0 + $0x28] sm:$0xff] }
 0x294   :  { %v823_v60 = vpop.f32.mrf.mxu2  ;;  %169 = vperm.xlu1 %1743, %v59_v31   ;;  %90 = vperm.xlu2 %1744, %v59_v31   ;;  %v843_v4 = vpop.f32.mrf.mxu3  ;;  %v281_v51 = vadd.f32 %v3444_v26, %v239_v37 }
 0x295   :  { %v824_v10 = vadd.f32 %v823_v60, %v280_v32 }
 0x296   :  { %v844_v6 = vadd.f32 %v843_v4, %v281_v51 }
 0x297   :  { %v1709_v58 = vmul.f32 -1.442695, %v824_v10 }
 0x298   :  { %v1798_v11 = vpop.eup %1797 }
 0x299   :  { %v1800_v3 = vpop.eup %1799  ;;  %v855_v2 = vadd.f32 1.0, %v1798_v11  ;;  %1801 = vpow2.f32 %v1709_v58 }
 0x29a   :  { %v856_v18 = vadd.f32 1.0, %v1800_v3 }
 0x29b   :  { %1803 = vrcp.f32 %v855_v2  ;;  %v869_v8 = vand.u32 2147483648, %v855_v2  ;;  %v867_v31 = vand.u32 2147483647, %v855_v2  ;;  %vm863_vm7 = vweird.f32 %v855_v2 }
 0x29c   :  { %1805 = vrcp.f32 %v856_v18  ;;  %1746 = vset.pattern.permute.xlu1 %v3405_v5  ;;  %v884_v11 = vand.u32 2147483648, %v856_v18  ;;  %v882_v37 = vand.u32 2147483647, %v856_v18  ;;  %vm878_vm8 = vweird.f32 %v856_v18 }
 0x29d   :  { %v870_v51 = vor.u32 1.1754944e-38, %v869_v8  ;;  %vm868_vm11 = vcmp.eq.f32.partialorder %v867_v31, 8.507059e+37  ;;  %v3482_v31 = vld [vmem:[#allocation17_spill] sm:$0xff] }
 0x29e   :  { %v885_v5 = vor.u32 1.1754944e-38, %v884_v11  ;;  %vm883_vm12 = vcmp.eq.f32.partialorder %v882_v37, 8.507059e+37  ;;  %v3483_v37 = vld [vmem:[#allocation18_spill] sm:$0xff] }
 0x29f   :  { %v1802_v59 = vpop.eup %1801 }
 0x2a0   :  { %v857_v47 = vadd.f32 1.0, %v1802_v59 }
 0x2a1   :  { %v1804_v9 = vpop.eup %1803 }
 0x2a2   :  { %v1806_v32 = vpop.eup %1805  ;;  %v859_v60 = vmul.f32 %v1804_v9, %v855_v2  ;;  %1807 = vrcp.f32 %v857_v47  ;;  %vm864_vm5 = vweird.f32 %v1804_v9  ;;  %vm893_vm14 = vweird.f32 %v857_v47 }
 0x2a3   :  { %v874_v10 = vmul.f32 %v1806_v32, %v856_v18  ;;  %1809 = vtanh.f32 %v844_v6  ;;  %vm879_vm6 = vweird.f32 %v1806_v32  ;;  %vm865_vm9 = vmor %vm863_vm7, %vm864_vm5 }
 0x2a4   :  { %v860_v58 = vsub.f32 1.0, %v859_v60  ;;  %vm880_vm10 = vmor %vm878_vm8, %vm879_vm6 }
 0x2a5   :  { %v875_v48 = vsub.f32 1.0, %v874_v10 }
 0x2a6   :  { %v861_v3 = vmul.f32 %v1804_v9, %v860_v58 }
 0x2a7   :  { %v876_v15 = vmul.f32 %v1806_v32, %v875_v48 }
 0x2a8   :  { %v1808_v59 = vpop.eup %1807  ;;  %v862_v26 = vadd.f32 %v1804_v9, %v861_v3 }
 0x2a9   :  { %v889_v4 = vmul.f32 %v1808_v59, %v857_v47  ;;  %v877_v60 = vadd.f32 %v1806_v32, %v876_v15  ;;  %v1810_v6 = vpop.eup %1809  ;;  %vm894_vm13 = vweird.f32 %v1808_v59  ;;  %v899_v15 = vand.u32 2147483648, %v857_v47 }
 0x2aa   :  { %v866_v10 = vsel %vm865_vm9, %v1804_v9, %v862_v26  ;;  %v897_v26 = vand.u32 2147483647, %v857_v47  ;;  %vm895_vm15 = vmor %vm893_vm14, %vm894_vm13  ;;  %v3481_v47 = vld [vmem:[#allocation16_spill] sm:$0xff] }
 0x2ab   :  { %v890_v14 = vsub.f32 1.0, %v889_v4  ;;  %v871_v58 = vsel %vm868_vm11, %v870_v51, %v866_v10  ;;  %v881_v49 = vsel %vm880_vm10, %v1806_v32, %v877_v60  ;;  %v900_v8 = vor.u32 1.1754944e-38, %v899_v15  ;;  %v3485_v4 = vld [vmem:[#allocation28_spill] sm:$0xff]  ;;  %v3486_v51 = vld [vmem:[#allocation29_spill] sm:$0xff]  ;;  %v3487_v60 = vld [vmem:[#allocation30_spill] sm:$0xff] }
 0x2ac   :  { %v886_v48 = vsel %vm883_vm12, %v885_v5, %v881_v49  ;;  %v905_v0 = vmul.f32 %v1810_v6, %v871_v58  ;;  %vm898_vm0 = vcmp.eq.f32.partialorder %v897_v26, 8.507059e+37  ;;  %v3488_v5 = vld [vmem:[#allocation31_spill] sm:$0xff]  ;;  %v3489_v10 = vld [vmem:[#allocation32_spill] sm:$0xff]  ;;  %v3490_v6 = vld [vmem:[#allocation33_spill] sm:$0xff] }
 0x2ad   :  { %v904_v36 = vmul.f32 %v886_v48, %v2619_v42  ;;  %v891_v3 = vmul.f32 %v1808_v59, %v890_v14  ;;  %v3479_v14 = vld [vmem:[#allocation14_spill] sm:$0xff]  ;;  %v3480_v42 = vld [vmem:[#allocation15_spill] sm:$0xff]  ;;  %v3496_v26 = vld [vmem:[#allocation40_spill] sm:$0xff] }
 0x2ae   :  { %v3491_v58 = vld [vmem:[#allocation34_spill] sm:$0xff]  ;;  %v3492_v48 = vld [vmem:[#allocation35_spill] sm:$0xff] }
 0x2af   :  { %v2835_v2 = vadd.f32 %v905_v0, %v904_v36  ;;  %v892_v18 = vadd.f32 %v1808_v59, %v891_v3  ;;  %v3477_v36 = vld [vmem:[#allocation12_spill] sm:$0xff]  ;;  %v3478_v0 = vld [vmem:[#allocation13_spill] sm:$0xff]  ;;  %v3495_v15 = vld [vmem:[#allocation39_spill] sm:$0xff] }
 0x2b0   :  { %v3493_v3 = vld [vmem:[#allocation36_spill] sm:$0xff] }
 0x2b1   :  { %1811 = vtanh.f32 %v2835_v2  ;;  %v896_v9 = vsel %vm895_vm15, %v1808_v59, %v892_v18  ;;  %v3484_v59 = vld [vmem:[#allocation58_spill] sm:$0xff]  ;;  %v3494_v18 = vld [vmem:[#allocation37_spill] sm:$0xff] }
 0x2b2   :  { %v901_v11 = vsel %vm898_vm0, %v900_v8, %v896_v9  ;;  %v3497_v9 = vld [vmem:[#allocation41_spill] sm:$0xff]  ;;  %v3498_v8 = vld [vmem:[#allocation42_spill] sm:$0xff] }
 0x2b7   :  { %v1812_v32 = vpop.eup %1811 }
 0x2b8   :  { %v908_v49 = vmul.f32 %v1812_v32, %v901_v11  ;;  %v3499_v32 = vld [vmem:[#allocation44_spill] sm:$0xff]  ;;  %v3500_v11 = vld [vmem:[#allocation45_spill] sm:$0xff] }
 0x2ba   :  { %929 = vmatmul.f32.vlgmr.msrb.gmra.mxu0 %v908_v49  ;;  %949 = vmatmul.f32.vlgmr.msrb.gmra.mxu1 %v908_v49 }
 0x2bb   :  { %969 = vmatmul.f32.vlgmr.msrb.gmra.mxu2 %v908_v49  ;;  %989 = vmatmul.f32.vlgmr.msrb.gmra.mxu3 %v908_v49  ;;  %v3501_v49 = vld [vmem:[#allocation46_spill] sm:$0xff] }
 0x2bc   :  { %1207 = vmatpush.msrb.mxu0 %v2622_v52  ;;  %1227 = vmatpush.msrb.mxu1 %v2625_v53 }
 0x2bd   :  { %1247 = vmatpush.msrb.mxu2 %v2628_v30  ;;  %1267 = vmatpush.msrb.mxu3 %v2631_v46 }
 0x2be   :  { %1208 = vmatpush.msrb.mxu0 %v2634_v7  ;;  %1228 = vmatpush.msrb.mxu1 %v2637_v12 }
 0x2bf   :  { %1248 = vmatpush.msrb.mxu2 %v2640_v16  ;;  %1268 = vmatpush.msrb.mxu3 %v2643_v17 }
 0x2c0   :  { %1209 = vmatpush.msrb.mxu0 %v2646_v22  ;;  %1229 = vmatpush.msrb.mxu1 %v2649_v23 }
 0x2c1   :  { %1249 = vmatpush.msrb.mxu2 %v2652_v24  ;;  %1269 = vmatpush.msrb.mxu3 %v2655_v25 }
 0x2c2   :  { %1210 = vmatpush.msrb.mxu0 %v2658_v27  ;;  %1230 = vmatpush.msrb.mxu1 %v2661_v28 }
 0x2c3   :  { %1250 = vmatpush.msrb.mxu2 %v2664_v29  ;;  %1270 = vmatpush.msrb.mxu3 %v2667_v33 }
 0x2c4   :  { %1211 = vmatpush.msrb.mxu0 %v2670_v34  ;;  %1231 = vmatpush.msrb.mxu1 %v2673_v39 }
 0x2c5   :  { %1251 = vmatpush.msrb.mxu2 %v2676_v40  ;;  %1271 = vmatpush.msrb.mxu3 %v2679_v41 }
 0x2c6   :  { %1212 = vmatpush.msrb.mxu0 %v2682_v43  ;;  %1232 = vmatpush.msrb.mxu1 %v2685_v44 }
 0x2c7   :  { %1252 = vmatpush.msrb.mxu2 %v2688_v50  ;;  %1272 = vmatpush.msrb.mxu3 %v2691_v55 }
 0x2c8   :  { %1213 = vmatpush.msrb.mxu0 %v2694_v56  ;;  %1233 = vmatpush.msrb.mxu1 %v2697_v57 }
 0x2c9   :  { %1253 = vmatpush.msrb.mxu2 %v2700_v61  ;;  %1273 = vmatpush.msrb.mxu3 %v2703_v62 }
 0x2ca   :  { %1214 = vmatpush.msrb.mxu0 %v2706_v63  ;;  %1234 = vmatpush.msrb.mxu1 %v2709_v1 }
 0x2cb   :  { %1254 = vmatpush.msrb.mxu2 %v2712_v19  ;;  %1274 = vmatpush.msrb.mxu3 %v2715_v20 }
 0x2cc   :  { %1215 = vmatpush.msrb.mxu0 %v2718_v45  ;;  %1235 = vmatpush.msrb.mxu1 %v3477_v36 }
 0x2cd   :  { %1255 = vmatpush.msrb.mxu2 %v3478_v0  ;;  %1275 = vmatpush.msrb.mxu3 %v3479_v14 }
 0x2ce   :  { %1216 = vmatpush.msrb.mxu0 %v3480_v42  ;;  %1236 = vmatpush.msrb.mxu1 %v3481_v47 }
 0x2cf   :  { %1256 = vmatpush.msrb.mxu2 %v3482_v31  ;;  %1276 = vmatpush.msrb.mxu3 %v3483_v37 }
 0x2d0   :  { %1217 = vmatpush.msrb.mxu0 %v3484_v59  ;;  %1237 = vmatpush.msrb.mxu1 %v3485_v4 }
 0x2d1   :  { %1257 = vmatpush.msrb.mxu2 %v3486_v51  ;;  %1277 = vmatpush.msrb.mxu3 %v3487_v60  ;;  %v3510_v60 = vld [vmem:[#allocation21_spill] sm:$0xff] }
 0x2d2   :  { %1218 = vmatpush.msrb.mxu0 %v3488_v5  ;;  %1238 = vmatpush.msrb.mxu1 %v3489_v10  ;;  %v3509_v10 = vld [vmem:[#allocation23_spill] sm:$0xff] }
 0x2d3   :  { %1258 = vmatpush.msrb.mxu2 %v3490_v6  ;;  %1278 = vmatpush.msrb.mxu3 %v3491_v58  ;;  %v3502_v58 = vld [vmem:[#allocation47_spill] sm:$0xff]  ;;  %v3508_v6 = vld [vmem:[#allocation22_spill] sm:$0xff] }
 0x2d4   :  { %1219 = vmatpush.msrb.mxu0 %v3492_v48  ;;  %1239 = vmatpush.msrb.mxu1 %v3493_v3  ;;  %v3503_v48 = vld [vmem:[#allocation48_spill] sm:$0xff]  ;;  %v3504_v3 = vld [vmem:[#allocation49_spill] sm:$0xff] }
 0x2d5   :  { %1259 = vmatpush.msrb.mxu2 %v3494_v18  ;;  %1279 = vmatpush.msrb.mxu3 %v3495_v15  ;;  %v3505_v18 = vld [vmem:[#allocation50_spill] sm:$0xff]  ;;  %v3506_v15 = vld [vmem:[#allocation51_spill] sm:$0xff] }
 0x2d6   :  { %1220 = vmatpush.msrb.mxu0 %v3496_v26  ;;  %1240 = vmatpush.msrb.mxu1 %v3497_v9  ;;  %v3507_v26 = vld [vmem:[#allocation52_spill] sm:$0xff]  ;;  %v86_v9 = vpop.permute.xlu0 %85 }
 0x2d7   :  { %1260 = vmatpush.msrb.mxu2 %v3498_v8  ;;  %1280 = vmatpush.msrb.mxu3 %v3499_v32  ;;  %v166_v8 = vpop.permute.xlu1 %165 }
 0x2d8   :  { %1221 = vmatpush.msrb.mxu0 %v3500_v11  ;;  %1241 = vmatpush.msrb.mxu1 %v3501_v49  ;;  %v208_v32 = vmul.f32 %v3508_v6, %v166_v8  ;;  %v209_v11 = vmul.f32 %v3509_v10, %v166_v8  ;;  %v132_v49 = vmul.f32 %v3433_v21, %v86_v9 }
 0x2d9   :  { %1261 = vmatpush.msrb.mxu2 %v3502_v58  ;;  %1281 = vmatpush.msrb.mxu3 %v3503_v48  ;;  %v133_v58 = vmul.f32 %v3434_v54, %v86_v9  ;;  %v3511_v54 = vld [vmem:[#allocation27_spill] sm:$0xff] }
 0x2da   :  { %1222 = vmatpush.msrb.mxu0 %v3504_v3  ;;  %1242 = vmatpush.msrb.mxu1 %v3505_v18  ;;  %v240_v5 = vadd.f32 %v208_v32, %v132_v49 }
 0x2db   :  { %1262 = vmatpush.msrb.mxu2 %v3506_v15  ;;  %1282 = vmatpush.msrb.mxu3 %v3507_v26  ;;  %v241_v48 = vadd.f32 %v209_v11, %v133_v58  ;;  %v210_v15 = vmul.f32 %v3438_v38, %v166_v8  ;;  %v134_v26 = vmul.f32 %v3510_v60, %v86_v9 }
 0x2dc   :  { %v282_v3 = vadd.f32 %v3439_v35, %v240_v5  ;;  %v3512_v5 = vld [vmem:[#allocation38_spill] sm:$0xff] }
 0x2dd   :  { %v283_v18 = vadd.f32 %v3440_v13, %v241_v48  ;;  %v242_v37 = vadd.f32 %v210_v15, %v134_v26  ;;  %v211_v49 = vmul.f32 %v3512_v5, %v166_v8  ;;  %v3513_v48 = vld [vmem:[#allocation43_spill] sm:$0xff] }
 0x2de   :  { %v135_v13 = vmul.f32 %v3513_v48, %v86_v9 }
 0x2df   :  { %v284_v32 = vadd.f32 %v3511_v54, %v242_v37 }
 0x337   :  { %v930_v51 = vpop.f32.mrf.mxu0  ;;  %v950_v4 = vpop.f32.mrf.mxu1 }
 0x338   :  { %v931_v59 = vadd.f32 %v930_v51, %v282_v3  ;;  %v951_v6 = vadd.f32 %v950_v4, %v283_v18  ;;  %v243_v4 = vadd.f32 %v211_v49, %v135_v13  ;;  %v3515_v13 = vmov 1  }
 0x33a   :  { %v1710_v10 = vmul.f32 -1.442695, %v931_v59  ;;  %v1711_v31 = vmul.f32 -1.442695, %v951_v6 }
 0x33c   :  { %1813 = vpow2.f32 %v1710_v10  ;;  %v3514_v10 = vld [vmem:[#allocation54_spill] sm:$0xff] }
 0x33d   :  { %1815 = vpow2.f32 %v1711_v31  ;;  %v60_v31 = vld [vmem:[%s3148_s0 + $0x30] sm:$0xff]  ;;  %v285_v6 = vadd.f32 %v3514_v10, %v243_v4 }
 0x33e   :  { %v970_v58 = vpop.f32.mrf.mxu2  ;;  %173 = vperm.xlu0 %1745, %v60_v31   ;;  %95 = vperm.xlu2 %1744, %v60_v31   ;;  %v990_v37 = vpop.f32.mrf.mxu3 }
 0x33f   :  { %v971_v11 = vadd.f32 %v970_v58, %v284_v32  ;;  %v991_v15 = vadd.f32 %v990_v37, %v285_v6 }
 0x341   :  { %v1712_v35 = vmul.f32 -1.442695, %v971_v11 }
 0x342   :  { %v1814_v38 = vpop.eup %1813 }
 0x343   :  { %v1816_v60 = vpop.eup %1815  ;;  %v1002_v21 = vadd.f32 1.0, %v1814_v38  ;;  %1817 = vpow2.f32 %v1712_v35 }
 0x344   :  { %v1003_v51 = vadd.f32 1.0, %v1816_v60 }
 0x345   :  { %1819 = vrcp.f32 %v1002_v21  ;;  %v1016_v8 = vand.u32 2147483648, %v1002_v21  ;;  %v1014_v11 = vand.u32 2147483647, %v1002_v21  ;;  %vm1010_vm3 = vweird.f32 %v1002_v21 }
 0x346   :  { %1821 = vrcp.f32 %v1003_v51  ;;  %1747 = vset.pattern.permute.xlu2 %v3515_v13  ;;  %v1031_v32 = vand.u32 2147483648, %v1003_v51  ;;  %v1029_v4 = vand.u32 2147483647, %v1003_v51  ;;  %vm1025_vm4 = vweird.f32 %v1003_v51 }
 0x347   :  { %v1017_v6 = vor.u32 1.1754944e-38, %v1016_v8  ;;  %vm1015_vm7 = vcmp.eq.f32.partialorder %v1014_v11, 8.507059e+37 }
 0x348   :  { %v1032_v13 = vor.u32 1.1754944e-38, %v1031_v32  ;;  %vm1030_vm8 = vcmp.eq.f32.partialorder %v1029_v4, 8.507059e+37  ;;  %v3521_v4 = vld [vmem:[#allocation30_spill] sm:$0xff] }
 0x349   :  { %v1818_v59 = vpop.eup %1817 }
 0x34a   :  { %v1004_v3 = vadd.f32 1.0, %v1818_v59 }
 0x34b   :  { %v1820_v18 = vpop.eup %1819 }
 0x34c   :  { %v1822_v26 = vpop.eup %1821  ;;  %v1006_v38 = vmul.f32 %v1820_v18, %v1002_v21  ;;  %1823 = vrcp.f32 %v1004_v3  ;;  %vm1011_vm1 = vweird.f32 %v1820_v18  ;;  %v1046_v8 = vand.u32 2147483648, %v1004_v3 }
 0x34d   :  { %v1021_v35 = vmul.f32 %v1822_v26, %v1003_v51  ;;  %1825 = vtanh.f32 %v991_v15  ;;  %vm1026_vm2 = vweird.f32 %v1822_v26  ;;  %vm1012_vm5 = vmor %vm1010_vm3, %vm1011_vm1  ;;  %vm1040_vm10 = vweird.f32 %v1004_v3 }
 0x34e   :  { %v1007_v60 = vsub.f32 1.0, %v1006_v38  ;;  %vm1027_vm6 = vmor %vm1025_vm4, %vm1026_vm2  ;;  %v1047_v11 = vor.u32 1.1754944e-38, %v1046_v8  ;;  %v3534_v8 = vld [vmem:[#allocation45_spill] sm:$0xff] }
 0x34f   :  { %v1022_v9 = vsub.f32 1.0, %v1021_v35 }
 0x350   :  { %v1008_v58 = vmul.f32 %v1820_v18, %v1007_v60 }
 0x351   :  { %v1023_v49 = vmul.f32 %v1822_v26, %v1022_v9 }
 0x352   :  { %v1824_v31 = vpop.eup %1823  ;;  %v1009_v59 = vadd.f32 %v1820_v18, %v1008_v58 }
 0x353   :  { %v1036_v37 = vmul.f32 %v1824_v31, %v1004_v3  ;;  %v1024_v38 = vadd.f32 %v1822_v26, %v1023_v49  ;;  %v1826_v15 = vpop.eup %1825  ;;  %vm1041_vm9 = vweird.f32 %v1824_v31 }
 0x354   :  { %v1013_v35 = vsel %vm1012_vm5, %v1820_v18, %v1009_v59  ;;  %v1044_v18 = vand.u32 2147483647, %v1004_v3  ;;  %vm1042_vm11 = vmor %vm1040_vm10, %vm1041_vm9  ;;  %v3520_v3 = vld [vmem:[#allocation29_spill] sm:$0xff]  ;;  %v3523_v59 = vld [vmem:[#allocation32_spill] sm:$0xff] }
 0x355   :  { %v1037_v10 = vsub.f32 1.0, %v1036_v37  ;;  %v1018_v60 = vsel %vm1015_vm7, %v1017_v6, %v1013_v35  ;;  %v1028_v5 = vsel %vm1027_vm6, %v1822_v26, %v1024_v38  ;;  %v3524_v37 = vld [vmem:[#allocation33_spill] sm:$0xff]  ;;  %v3525_v6 = vld [vmem:[#allocation34_spill] sm:$0xff]  ;;  %v3526_v38 = vld [vmem:[#allocation35_spill] sm:$0xff] }
 0x356   :  { %v1033_v9 = vsel %vm1030_vm8, %v1032_v13, %v1028_v5  ;;  %v1052_v48 = vmul.f32 %v1826_v15, %v1018_v60  ;;  %vm1045_vm12 = vcmp.eq.f32.partialorder %v1044_v18, 8.507059e+37  ;;  %v3527_v13 = vld [vmem:[#allocation36_spill] sm:$0xff]  ;;  %v3528_v35 = vld [vmem:[#allocation37_spill] sm:$0xff]  ;;  %v3529_v15 = vld [vmem:[#allocation39_spill] sm:$0xff] }
 0x357   :  { %v1051_v54 = vmul.f32 %v1033_v9, %v2835_v2  ;;  %v1038_v58 = vmul.f32 %v1824_v31, %v1037_v10  ;;  %v3517_v2 = vld [vmem:[#allocation18_spill] sm:$0xff]  ;;  %v3519_v10 = vld [vmem:[#allocation28_spill] sm:$0xff]  ;;  %v3531_v9 = vld [vmem:[#allocation41_spill] sm:$0xff] }
 0x358   :  { %v3530_v60 = vld [vmem:[#allocation40_spill] sm:$0xff]  ;;  %v3535_v18 = vld [vmem:[#allocation46_spill] sm:$0xff] }
 0x359   :  { %v2919_v21 = vadd.f32 %v1052_v48, %v1051_v54  ;;  %v1039_v51 = vadd.f32 %v1824_v31, %v1038_v58  ;;  %v3516_v54 = vld [vmem:[#allocation17_spill] sm:$0xff]  ;;  %v3518_v48 = vld [vmem:[#allocation58_spill] sm:$0xff] }
 0x35a   :  { %v3532_v58 = vld [vmem:[#allocation42_spill] sm:$0xff] }
 0x35b   :  { %1827 = vtanh.f32 %v2919_v21  ;;  %v1043_v32 = vsel %vm1042_vm11, %v1824_v31, %v1039_v51  ;;  %v3522_v31 = vld [vmem:[#allocation31_spill] sm:$0xff]  ;;  %v3533_v51 = vld [vmem:[#allocation44_spill] sm:$0xff] }
 0x35c   :  { %v1048_v49 = vsel %vm1045_vm12, %v1047_v11, %v1043_v32  ;;  %v3536_v32 = vld [vmem:[#allocation47_spill] sm:$0xff]  ;;  %v3537_v11 = vld [vmem:[#allocation48_spill] sm:$0xff] }
 0x361   :  { %v1828_v26 = vpop.eup %1827 }
 0x362   :  { %v1055_v5 = vmul.f32 %v1828_v26, %v1048_v49  ;;  %v3538_v26 = vld [vmem:[#allocation49_spill] sm:$0xff]  ;;  %v3539_v49 = vld [vmem:[#allocation50_spill] sm:$0xff] }
 0x364   :  { %1076 = vmatmul.f32.vlgmr.msra.gmra.mxu0 %v1055_v5  ;;  %1096 = vmatmul.f32.vlgmr.msra.gmra.mxu1 %v1055_v5 }
 0x365   :  { %1116 = vmatmul.f32.vlgmr.msra.gmra.mxu2 %v1055_v5  ;;  %1136 = vmatmul.f32.vlgmr.msra.gmra.mxu3 %v1055_v5  ;;  %v3540_v5 = vld [vmem:[#allocation51_spill] sm:$0xff] }
 0x366   :  { %1354 = vmatpush.msra.mxu0 %v2622_v52  ;;  %1374 = vmatpush.msra.mxu1 %v2625_v53 }
 0x367   :  { %1394 = vmatpush.msra.mxu2 %v2628_v30  ;;  %1414 = vmatpush.msra.mxu3 %v2631_v46 }
 0x368   :  { %1355 = vmatpush.msra.mxu0 %v2634_v7  ;;  %1375 = vmatpush.msra.mxu1 %v2637_v12 }
 0x369   :  { %1395 = vmatpush.msra.mxu2 %v2640_v16  ;;  %1415 = vmatpush.msra.mxu3 %v2643_v17 }
 0x36a   :  { %1356 = vmatpush.msra.mxu0 %v2646_v22  ;;  %1376 = vmatpush.msra.mxu1 %v2649_v23 }
 0x36b   :  { %1396 = vmatpush.msra.mxu2 %v2652_v24  ;;  %1416 = vmatpush.msra.mxu3 %v2655_v25 }
 0x36c   :  { %1357 = vmatpush.msra.mxu0 %v2658_v27  ;;  %1377 = vmatpush.msra.mxu1 %v2661_v28 }
 0x36d   :  { %1397 = vmatpush.msra.mxu2 %v2664_v29  ;;  %1417 = vmatpush.msra.mxu3 %v2667_v33 }
 0x36e   :  { %1358 = vmatpush.msra.mxu0 %v2670_v34  ;;  %1378 = vmatpush.msra.mxu1 %v2673_v39 }
 0x36f   :  { %1398 = vmatpush.msra.mxu2 %v2676_v40  ;;  %1418 = vmatpush.msra.mxu3 %v2679_v41 }
 0x370   :  { %1359 = vmatpush.msra.mxu0 %v2682_v43  ;;  %1379 = vmatpush.msra.mxu1 %v2685_v44 }
 0x371   :  { %1399 = vmatpush.msra.mxu2 %v2688_v50  ;;  %1419 = vmatpush.msra.mxu3 %v2691_v55 }
 0x372   :  { %1360 = vmatpush.msra.mxu0 %v2694_v56  ;;  %1380 = vmatpush.msra.mxu1 %v2697_v57 }
 0x373   :  { %1400 = vmatpush.msra.mxu2 %v2700_v61  ;;  %1420 = vmatpush.msra.mxu3 %v2703_v62 }
 0x374   :  { %1361 = vmatpush.msra.mxu0 %v2706_v63  ;;  %1381 = vmatpush.msra.mxu1 %v2709_v1 }
 0x375   :  { %1401 = vmatpush.msra.mxu2 %v2712_v19  ;;  %1421 = vmatpush.msra.mxu3 %v2715_v20 }
 0x376   :  { %1362 = vmatpush.msra.mxu0 %v2718_v45  ;;  %1382 = vmatpush.msra.mxu1 %v3477_v36 }
 0x377   :  { %1402 = vmatpush.msra.mxu2 %v3478_v0  ;;  %1422 = vmatpush.msra.mxu3 %v3479_v14 }
 0x378   :  { %1363 = vmatpush.msra.mxu0 %v3480_v42  ;;  %1383 = vmatpush.msra.mxu1 %v3481_v47 }
 0x379   :  { %1403 = vmatpush.msra.mxu2 %v3516_v54  ;;  %1423 = vmatpush.msra.mxu3 %v3517_v2 }
 0x37a   :  { %1364 = vmatpush.msra.mxu0 %v3518_v48  ;;  %1384 = vmatpush.msra.mxu1 %v3519_v10 }
 0x37b   :  { %1404 = vmatpush.msra.mxu2 %v3520_v3  ;;  %1424 = vmatpush.msra.mxu3 %v3521_v4  ;;  %v3549_v4 = vld [vmem:[#allocation26_spill] sm:$0xff] }
 0x37c   :  { %1365 = vmatpush.msra.mxu0 %v3522_v31  ;;  %1385 = vmatpush.msra.mxu1 %v3523_v59  ;;  %v3547_v59 = vld [vmem:[#allocation24_spill] sm:$0xff]  ;;  %v3548_v31 = vld [vmem:[#allocation25_spill] sm:$0xff] }
 0x37d   :  { %1405 = vmatpush.msra.mxu2 %v3524_v37  ;;  %1425 = vmatpush.msra.mxu3 %v3525_v6  ;;  %v3546_v37 = vld [vmem:[#allocation21_spill] sm:$0xff] }
 0x37e   :  { %1366 = vmatpush.msra.mxu0 %v3526_v38  ;;  %1386 = vmatpush.msra.mxu1 %v3527_v13  ;;  %v3544_v13 = vld [vmem:[#allocation22_spill] sm:$0xff]  ;;  %v3545_v38 = vld [vmem:[#allocation23_spill] sm:$0xff] }
 0x37f   :  { %1406 = vmatpush.msra.mxu2 %v3528_v35  ;;  %1426 = vmatpush.msra.mxu3 %v3529_v15  ;;  %v3542_v15 = vld [vmem:[#allocation19_spill] sm:$0xff]  ;;  %v3543_v35 = vld [vmem:[#allocation20_spill] sm:$0xff] }
 0x380   :  { %1367 = vmatpush.msra.mxu0 %v3530_v60  ;;  %1387 = vmatpush.msra.mxu1 %v3531_v9  ;;  %v3541_v60 = vld [vmem:[#allocation52_spill] sm:$0xff]  ;;  %v91_v9 = vpop.permute.xlu2 %90 }
 0x381   :  { %1407 = vmatpush.msra.mxu2 %v3532_v58  ;;  %1427 = vmatpush.msra.mxu3 %v3533_v51  ;;  %v170_v58 = vpop.permute.xlu1 %169  ;;  %v136_v51 = vmul.f32 %v3542_v15, %v91_v9 }
 0x382   :  { %1368 = vmatpush.msra.mxu0 %v3534_v8  ;;  %1388 = vmatpush.msra.mxu1 %v3535_v18  ;;  %v137_v8 = vmul.f32 %v3543_v35, %v91_v9  ;;  %v212_v18 = vmul.f32 %v3544_v13, %v170_v58 }
 0x383   :  { %1408 = vmatpush.msra.mxu2 %v3536_v32  ;;  %1428 = vmatpush.msra.mxu3 %v3537_v11  ;;  %v213_v32 = vmul.f32 %v3545_v38, %v170_v58  ;;  %v3550_v38 = vld [vmem:[#allocation27_spill] sm:$0xff] }
 0x384   :  { %1369 = vmatpush.msra.mxu0 %v3538_v26  ;;  %1389 = vmatpush.msra.mxu1 %v3539_v49  ;;  %v244_v6 = vadd.f32 %v212_v18, %v136_v51  ;;  %v138_v26 = vmul.f32 %v3546_v37, %v91_v9  ;;  %v214_v49 = vmul.f32 %v3547_v59, %v170_v58  ;;  %v3552_v59 = vld [vmem:[#allocation38_spill] sm:$0xff] }
 0x385   :  { %1409 = vmatpush.msra.mxu2 %v3540_v5  ;;  %1429 = vmatpush.msra.mxu3 %v3541_v60  ;;  %v245_v11 = vadd.f32 %v213_v32, %v137_v8  ;;  %v3551_v32 = vld [vmem:[#allocation43_spill] sm:$0xff]  ;;  %v215_v13 = vmul.f32 %v3552_v59, %v170_v58 }
 0x386   :  { %v286_v5 = vadd.f32 %v3548_v31, %v244_v6  ;;  %v246_v2 = vadd.f32 %v214_v49, %v138_v26  ;;  %v139_v37 = vmul.f32 %v3551_v32, %v91_v9 }
 0x387   :  { %v287_v60 = vadd.f32 %v3549_v4, %v245_v11 }
 0x388   :  { %v288_v51 = vadd.f32 %v3550_v38, %v246_v2 }
 0x3e1   :  { %v1077_v3 = vpop.f32.mrf.mxu0  ;;  %v1097_v10 = vpop.f32.mrf.mxu1 }
 0x3e2   :  { %v1078_v48 = vadd.f32 %v1077_v3, %v286_v5  ;;  %v1098_v15 = vadd.f32 %v1097_v10, %v287_v60  ;;  %v247_v10 = vadd.f32 %v215_v13, %v139_v37 }
 0x3e4   :  { %v1713_v35 = vmul.f32 -1.442695, %v1078_v48  ;;  %v1714_v54 = vmul.f32 -1.442695, %v1098_v15 }
 0x3e6   :  { %1829 = vpow2.f32 %v1713_v35 }
 0x3e7   :  { %1831 = vpow2.f32 %v1714_v54  ;;  %v3553_v54 = vld [vmem:[#allocation54_spill] sm:$0xff] }
 0x3e8   :  { %v1117_v8 = vpop.f32.mrf.mxu2  ;;  %v1137_v48 = vpop.f32.mrf.mxu3  ;;  %v289_v15 = vadd.f32 %v3553_v54, %v247_v10 }
 0x3e9   :  { %v1118_v18 = vadd.f32 %v1117_v8, %v288_v51 }
 0x3ea   :  { %v1138_v26 = vadd.f32 %v1137_v48, %v289_v15 }
 0x3eb   :  { %v1715_v6 = vmul.f32 -1.442695, %v1118_v18 }
 0x3ec   :  { %v1830_v31 = vpop.eup %1829 }
 0x3ed   :  { %v1832_v11 = vpop.eup %1831  ;;  %v1149_v4 = vadd.f32 1.0, %v1830_v31  ;;  %1833 = vpow2.f32 %v1715_v6 }
 0x3ee   :  { %v1150_v3 = vadd.f32 1.0, %v1832_v11 }
 0x3ef   :  { %1835 = vrcp.f32 %v1149_v4  ;;  %v1163_v8 = vand.u32 2147483648, %v1149_v4  ;;  %v1161_v37 = vand.u32 2147483647, %v1149_v4  ;;  %vm1157_vm15 = vweird.f32 %v1149_v4 }
 0x3f0   :  { %1837 = vrcp.f32 %v1150_v3  ;;  %v1178_v31 = vand.u32 2147483648, %v1150_v3  ;;  %v1176_v6 = vand.u32 2147483647, %v1150_v3  ;;  %vm1172_vm0 = vweird.f32 %v1150_v3 }
 0x3f1   :  { %vm1162_vm3 = vcmp.eq.f32.partialorder %v1161_v37, 8.507059e+37 }
 0x3f2   :  { %vm1177_vm4 = vcmp.eq.f32.partialorder %v1176_v6, 8.507059e+37 }
 0x3f3   :  { %v1834_v35 = vpop.eup %1833 }
 0x3f4   :  { %v1151_v2 = vadd.f32 1.0, %v1834_v35  ;;  %v1164_v35 = vor.u32 1.1754944e-38, %v1163_v8 }
 0x3f5   :  { %v1836_v60 = vpop.eup %1835 }
 0x3f6   :  { %v1838_v49 = vpop.eup %1837  ;;  %v1153_v9 = vmul.f32 %v1836_v60, %v1149_v4  ;;  %1839 = vrcp.f32 %v1151_v2  ;;  %vm1158_vm13 = vweird.f32 %v1836_v60  ;;  %v1193_v8 = vand.u32 2147483648, %v1151_v2 }
 0x3f7   :  { %v1168_v58 = vmul.f32 %v1838_v49, %v1150_v3  ;;  %1841 = vtanh.f32 %v1138_v26  ;;  %vm1173_vm14 = vweird.f32 %v1838_v49  ;;  %vm1159_vm1 = vmor %vm1157_vm15, %vm1158_vm13  ;;  %vm1187_vm6 = vweird.f32 %v1151_v2 }
 0x3f8   :  { %v1154_v5 = vsub.f32 1.0, %v1153_v9  ;;  %vm1174_vm2 = vmor %vm1172_vm0, %vm1173_vm14  ;;  %v1179_v9 = vor.u32 1.1754944e-38, %v1178_v31  ;;  %v1194_v37 = vor.u32 1.1754944e-38, %v1193_v8 }
 0x3f9   :  { %v1169_v51 = vsub.f32 1.0, %v1168_v58 }
 0x3fa   :  { %v1155_v18 = vmul.f32 %v1836_v60, %v1154_v5 }
 0x3fb   :  { %v1170_v13 = vmul.f32 %v1838_v49, %v1169_v51 }
 0x3fc   :  { %v1840_v11 = vpop.eup %1839  ;;  %v1156_v10 = vadd.f32 %v1836_v60, %v1155_v18 }
 0x3fd   :  { %v1183_v48 = vmul.f32 %v1840_v11, %v1151_v2  ;;  %v1171_v15 = vadd.f32 %v1838_v49, %v1170_v13  ;;  %v1842_v26 = vpop.eup %1841  ;;  %vm1188_vm5 = vweird.f32 %v1840_v11 }
 0x3fe   :  { %v1160_v58 = vsel %vm1159_vm1, %v1836_v60, %v1156_v10  ;;  %v1191_v60 = vand.u32 2147483647, %v1151_v2  ;;  %vm1189_vm7 = vmor %vm1187_vm6, %vm1188_vm5  ;;  %v3586_v2 = vld [vmem:[#allocation25_spill] sm:$0xff] }
 0x3ff   :  { %v1184_v54 = vsub.f32 1.0, %v1183_v48  ;;  %v1165_v5 = vsel %vm1162_vm3, %v1164_v35, %v1160_v58  ;;  %v1175_v59 = vsel %vm1174_vm2, %v1838_v49, %v1171_v15 }
 0x400   :  { %v1180_v51 = vsel %vm1177_vm4, %v1179_v9, %v1175_v59  ;;  %v1199_v32 = vmul.f32 %v1842_v26, %v1165_v5  ;;  %vm1192_vm8 = vcmp.eq.f32.partialorder %v1191_v60, 8.507059e+37  ;;  %v3589_v60 = vld [vmem:[#allocation43_spill] sm:$0xff] }
 0x401   :  { %v1198_v38 = vmul.f32 %v1180_v51, %v2919_v21  ;;  %v1185_v18 = vmul.f32 %v1840_v11, %v1184_v54  ;;  %v3584_v21 = vld [vmem:[#allocation21_spill] sm:$0xff]  ;;  %v3588_v51 = vld [vmem:[#allocation27_spill] sm:$0xff] }
 0x403   :  { %v2999_v4 = vadd.f32 %v1199_v32, %v1198_v38  ;;  %v1186_v3 = vadd.f32 %v1840_v11, %v1185_v18  ;;  %v3585_v32 = vld [vmem:[#allocation24_spill] sm:$0xff] }
 0x405   :  { %1843 = vtanh.f32 %v2999_v4  ;;  %v1190_v31 = vsel %vm1189_vm7, %v1840_v11, %v1186_v3  ;;  %v3587_v11 = vld [vmem:[#allocation26_spill] sm:$0xff] }
 0x406   :  { %v1195_v13 = vsel %vm1192_vm8, %v1194_v37, %v1190_v31  ;;  %v3590_v37 = vld [vmem:[#allocation38_spill] sm:$0xff] }
 0x40b   :  { %v1844_v49 = vpop.eup %1843 }
 0x40c   :  { %v1202_v59 = vmul.f32 %v1844_v49, %v1195_v13 }
 0x40e   :  { %1223 = vmatmul.f32.vlgmr.msrb.gmra.mxu0 %v1202_v59  ;;  %1243 = vmatmul.f32.vlgmr.msrb.gmra.mxu1 %v1202_v59 }
 0x40f   :  { %1263 = vmatmul.f32.vlgmr.msrb.gmra.mxu2 %v1202_v59  ;;  %1283 = vmatmul.f32.vlgmr.msrb.gmra.mxu3 %v1202_v59 }
 0x410   :  { %1497 = vmatpush.msrb.mxu0 %v2622_v52  ;;  %1517 = vmatpush.msrb.mxu1 %v2625_v53  ;;  %v3554_v52 = vld [vmem:[#allocation17_spill] sm:$0xff]  ;;  %v3555_v53 = vld [vmem:[#allocation18_spill] sm:$0xff] }
 0x411   :  { %1537 = vmatpush.msrb.mxu2 %v2628_v30  ;;  %1557 = vmatpush.msrb.mxu3 %v2631_v46  ;;  %v3556_v30 = vld [vmem:[#allocation58_spill] sm:$0xff]  ;;  %v3557_v46 = vld [vmem:[#allocation28_spill] sm:$0xff] }
 0x412   :  { %1498 = vmatpush.msrb.mxu0 %v2634_v7  ;;  %1518 = vmatpush.msrb.mxu1 %v2637_v12  ;;  %v3558_v7 = vld [vmem:[#allocation29_spill] sm:$0xff]  ;;  %v3559_v12 = vld [vmem:[#allocation30_spill] sm:$0xff] }
 0x413   :  { %1538 = vmatpush.msrb.mxu2 %v2640_v16  ;;  %1558 = vmatpush.msrb.mxu3 %v2643_v17  ;;  %v3560_v16 = vld [vmem:[#allocation31_spill] sm:$0xff]  ;;  %v3561_v17 = vld [vmem:[#allocation32_spill] sm:$0xff] }
 0x414   :  { %1499 = vmatpush.msrb.mxu0 %v2646_v22  ;;  %1519 = vmatpush.msrb.mxu1 %v2649_v23  ;;  %v3562_v22 = vld [vmem:[#allocation33_spill] sm:$0xff]  ;;  %v3563_v23 = vld [vmem:[#allocation34_spill] sm:$0xff] }
 0x415   :  { %1539 = vmatpush.msrb.mxu2 %v2652_v24  ;;  %1559 = vmatpush.msrb.mxu3 %v2655_v25  ;;  %v3564_v24 = vld [vmem:[#allocation35_spill] sm:$0xff]  ;;  %v3565_v25 = vld [vmem:[#allocation36_spill] sm:$0xff] }
 0x416   :  { %1500 = vmatpush.msrb.mxu0 %v2658_v27  ;;  %1520 = vmatpush.msrb.mxu1 %v2661_v28  ;;  %v3566_v27 = vld [vmem:[#allocation37_spill] sm:$0xff]  ;;  %v3567_v28 = vld [vmem:[#allocation39_spill] sm:$0xff] }
 0x417   :  { %1540 = vmatpush.msrb.mxu2 %v2664_v29  ;;  %1560 = vmatpush.msrb.mxu3 %v2667_v33  ;;  %v3568_v29 = vld [vmem:[#allocation40_spill] sm:$0xff]  ;;  %v3569_v33 = vld [vmem:[#allocation41_spill] sm:$0xff] }
 0x418   :  { %1501 = vmatpush.msrb.mxu0 %v2670_v34  ;;  %1521 = vmatpush.msrb.mxu1 %v2673_v39  ;;  %v3570_v34 = vld [vmem:[#allocation42_spill] sm:$0xff]  ;;  %v3571_v39 = vld [vmem:[#allocation44_spill] sm:$0xff] }
 0x419   :  { %1541 = vmatpush.msrb.mxu2 %v2676_v40  ;;  %1561 = vmatpush.msrb.mxu3 %v2679_v41  ;;  %v3572_v40 = vld [vmem:[#allocation45_spill] sm:$0xff]  ;;  %v3573_v41 = vld [vmem:[#allocation46_spill] sm:$0xff] }
 0x41a   :  { %1502 = vmatpush.msrb.mxu0 %v2682_v43  ;;  %1522 = vmatpush.msrb.mxu1 %v2685_v44  ;;  %v3574_v43 = vld [vmem:[#allocation47_spill] sm:$0xff]  ;;  %v3575_v44 = vld [vmem:[#allocation48_spill] sm:$0xff] }
 0x41b   :  { %1542 = vmatpush.msrb.mxu2 %v2688_v50  ;;  %1562 = vmatpush.msrb.mxu3 %v2691_v55  ;;  %v3576_v50 = vld [vmem:[#allocation49_spill] sm:$0xff]  ;;  %v3577_v55 = vld [vmem:[#allocation50_spill] sm:$0xff] }
 0x41c   :  { %1503 = vmatpush.msrb.mxu0 %v2694_v56  ;;  %1523 = vmatpush.msrb.mxu1 %v2697_v57  ;;  %v3578_v56 = vld [vmem:[#allocation51_spill] sm:$0xff]  ;;  %v3579_v57 = vld [vmem:[#allocation52_spill] sm:$0xff] }
 0x41d   :  { %1543 = vmatpush.msrb.mxu2 %v2700_v61  ;;  %1563 = vmatpush.msrb.mxu3 %v2703_v62  ;;  %v96_v61 = vpop.permute.xlu2 %95  ;;  %v174_v62 = vpop.permute.xlu0 %173 }
 0x41e   :  { %1504 = vmatpush.msrb.mxu0 %v2706_v63  ;;  %1524 = vmatpush.msrb.mxu1 %v2709_v1  ;;  %v3580_v63 = vld [vmem:[#allocation19_spill] sm:$0xff]  ;;  %v142_v38 = vmul.f32 %v3584_v21, %v96_v61  ;;  %v218_v54 = vmul.f32 %v3585_v32, %v174_v62  ;;  %v143_v31 = vmul.f32 %v3589_v60, %v96_v61 }
 0x41f   :  { %1544 = vmatpush.msrb.mxu2 %v2712_v19  ;;  %1564 = vmatpush.msrb.mxu3 %v2715_v20  ;;  %v140_v1 = vmul.f32 %v3580_v63, %v96_v61  ;;  %v3581_v19 = vld [vmem:[#allocation20_spill] sm:$0xff]  ;;  %v219_v49 = vmul.f32 %v3590_v37, %v174_v62 }
 0x420   :  { %1505 = vmatpush.msrb.mxu0 %v2718_v45  ;;  %1525 = vmatpush.msrb.mxu1 %v3477_v36  ;;  %v141_v20 = vmul.f32 %v3581_v19, %v96_v61  ;;  %v3582_v45 = vld [vmem:[#allocation22_spill] sm:$0xff]  ;;  %v250_v58 = vadd.f32 %v218_v54, %v142_v38 }
 0x421   :  { %1545 = vmatpush.msrb.mxu2 %v3478_v0  ;;  %1565 = vmatpush.msrb.mxu3 %v3479_v14  ;;  %v216_v36 = vmul.f32 %v3582_v45, %v174_v62  ;;  %v3583_v0 = vld [vmem:[#allocation23_spill] sm:$0xff] }
 0x422   :  { %1506 = vmatpush.msrb.mxu0 %v3480_v42  ;;  %1526 = vmatpush.msrb.mxu1 %v3481_v47  ;;  %v217_v14 = vmul.f32 %v3583_v0, %v174_v62  ;;  %v292_v18 = vadd.f32 %v3588_v51, %v250_v58 }
 0x423   :  { %1546 = vmatpush.msrb.mxu2 %v3554_v52  ;;  %1566 = vmatpush.msrb.mxu3 %v3555_v53  ;;  %v248_v42 = vadd.f32 %v216_v36, %v140_v1 }
 0x424   :  { %1507 = vmatpush.msrb.mxu0 %v3556_v30  ;;  %1527 = vmatpush.msrb.mxu1 %v3557_v46  ;;  %v249_v47 = vadd.f32 %v217_v14, %v141_v20  ;;  %v251_v46 = vadd.f32 %v219_v49, %v143_v31 }
 0x425   :  { %1547 = vmatpush.msrb.mxu2 %v3558_v7  ;;  %1567 = vmatpush.msrb.mxu3 %v3559_v12  ;;  %v290_v6 = vadd.f32 %v3586_v2, %v248_v42  ;;  %v61_v7 = vld [vmem:[%s3148_s0 + $0x38] sm:$0xff] }
 0x426   :  { %1508 = vmatpush.msrb.mxu0 %v3560_v16  ;;  %1528 = vmatpush.msrb.mxu1 %v3561_v17  ;;  %v291_v10 = vadd.f32 %v3587_v11, %v249_v47  ;;  %v3591_v17 = vld [vmem:[#allocation54_spill] sm:$0xff] }
 0x427   :  { %1548 = vmatpush.msrb.mxu2 %v3562_v22  ;;  %1568 = vmatpush.msrb.mxu3 %v3563_v23  ;;  %v293_v22 = vadd.f32 %v3591_v17, %v251_v46 }
 0x428   :  { %1509 = vmatpush.msrb.mxu0 %v3564_v24  ;;  %1529 = vmatpush.msrb.mxu1 %v3565_v25 }
 0x429   :  { %1549 = vmatpush.msrb.mxu2 %v3566_v27  ;;  %1569 = vmatpush.msrb.mxu3 %v3567_v28 }
 0x42a   :  { %1510 = vmatpush.msrb.mxu0 %v3568_v29  ;;  %1530 = vmatpush.msrb.mxu1 %v3569_v33 }
 0x42b   :  { %1550 = vmatpush.msrb.mxu2 %v3570_v34  ;;  %1570 = vmatpush.msrb.mxu3 %v3571_v39 }
 0x42c   :  { %1511 = vmatpush.msrb.mxu0 %v3572_v40  ;;  %1531 = vmatpush.msrb.mxu1 %v3573_v41 }
 0x42d   :  { %1551 = vmatpush.msrb.mxu2 %v3574_v43  ;;  %1571 = vmatpush.msrb.mxu3 %v3575_v44 }
 0x42e   :  { %1512 = vmatpush.msrb.mxu0 %v3576_v50  ;;  %1532 = vmatpush.msrb.mxu1 %v3577_v55 }
 0x42f   :  { %1552 = vmatpush.msrb.mxu2 %v3578_v56  ;;  %1572 = vmatpush.msrb.mxu3 %v3579_v57 }
 0x430   :  { %100 = vperm.xlu1 %1746, %v61_v7   ;;  %177 = vperm.xlu2 %1747, %v61_v7  }
 0x48b   :  { %v1224_v48 = vpop.f32.mrf.mxu0  ;;  %v1244_v35 = vpop.f32.mrf.mxu1 }
 0x48c   :  { %v1225_v15 = vadd.f32 %v1224_v48, %v290_v6  ;;  %v1245_v9 = vadd.f32 %v1244_v35, %v291_v10 }
 0x48e   :  { %v1716_v26 = vmul.f32 -1.442695, %v1225_v15  ;;  %v1717_v5 = vmul.f32 -1.442695, %v1245_v9 }
 0x490   :  { %1845 = vpow2.f32 %v1716_v26 }
 0x491   :  { %1847 = vpow2.f32 %v1717_v5 }
 0x492   :  { %v1264_v3 = vpop.f32.mrf.mxu2  ;;  %v1284_v12 = vpop.f32.mrf.mxu3 }
 0x493   :  { %v1265_v8 = vadd.f32 %v1264_v3, %v292_v18  ;;  %v1285_v25 = vadd.f32 %v1284_v12, %v293_v22 }
 0x495   :  { %v1718_v13 = vmul.f32 -1.442695, %v1265_v8 }
 0x496   :  { %v1846_v59 = vpop.eup %1845 }
 0x497   :  { %v1848_v52 = vpop.eup %1847  ;;  %v1296_v53 = vadd.f32 1.0, %v1846_v59  ;;  %1849 = vpow2.f32 %v1718_v13 }
 0x498   :  { %v1297_v30 = vadd.f32 1.0, %v1848_v52 }
 0x499   :  { %1851 = vrcp.f32 %v1296_v53  ;;  %v1310_v39 = vand.u32 2147483648, %v1296_v53  ;;  %v1308_v43 = vand.u32 2147483647, %v1296_v53  ;;  %vm1304_vm11 = vweird.f32 %v1296_v53 }
 0x49a   :  { %1853 = vrcp.f32 %v1297_v30  ;;  %v1325_v40 = vand.u32 2147483648, %v1297_v30  ;;  %v1323_v50 = vand.u32 2147483647, %v1297_v30  ;;  %vm1319_vm12 = vweird.f32 %v1297_v30 }
 0x49b   :  { %v1311_v61 = vor.u32 1.1754944e-38, %v1310_v39  ;;  %vm1309_vm15 = vcmp.eq.f32.partialorder %v1308_v43, 8.507059e+37 }
 0x49c   :  { %v1326_v1 = vor.u32 1.1754944e-38, %v1325_v40  ;;  %vm1324_vm0 = vcmp.eq.f32.partialorder %v1323_v50, 8.507059e+37 }
 0x49d   :  { %v1850_v16 = vpop.eup %1849 }
 0x49e   :  { %v1298_v23 = vadd.f32 1.0, %v1850_v16 }
 0x49f   :  { %v1852_v24 = vpop.eup %1851 }
 0x4a0   :  { %v1854_v27 = vpop.eup %1853  ;;  %v1300_v28 = vmul.f32 %v1852_v24, %v1296_v53  ;;  %1855 = vrcp.f32 %v1298_v23  ;;  %vm1305_vm9 = vweird.f32 %v1852_v24  ;;  %v1340_v15 = vand.u32 2147483648, %v1298_v23 }
 0x4a1   :  { %v1315_v29 = vmul.f32 %v1854_v27, %v1297_v30  ;;  %1857 = vtanh.f32 %v1285_v25  ;;  %vm1320_vm10 = vweird.f32 %v1854_v27  ;;  %vm1306_vm13 = vmor %vm1304_vm11, %vm1305_vm9  ;;  %vm1334_vm2 = vweird.f32 %v1298_v23 }
 0x4a2   :  { %v1301_v33 = vsub.f32 1.0, %v1300_v28  ;;  %vm1321_vm14 = vmor %vm1319_vm12, %vm1320_vm10  ;;  %v1338_v9 = vand.u32 2147483647, %v1298_v23  ;;  %v1341_v26 = vor.u32 1.1754944e-38, %v1340_v15  ;;  %v101_v8 = vpop.permute.xlu1 %100 }
 0x4a3   :  { %v1316_v34 = vsub.f32 1.0, %v1315_v29  ;;  %v144_v13 = vmul.f32 %v3580_v63, %v101_v8  ;;  %v145_v59 = vmul.f32 %v3581_v19, %v101_v8  ;;  %v146_v12 = vmul.f32 %v3584_v21, %v101_v8 }
 0x4a4   :  { %v1302_v41 = vmul.f32 %v1852_v24, %v1301_v33  ;;  %vm1339_vm4 = vcmp.eq.f32.partialorder %v1338_v9, 8.507059e+37  ;;  %v147_v21 = vmul.f32 %v3589_v60, %v101_v8 }
 0x4a5   :  { %v1317_v44 = vmul.f32 %v1854_v27, %v1316_v34 }
 0x4a6   :  { %v1856_v55 = vpop.eup %1855  ;;  %v1303_v56 = vadd.f32 %v1852_v24, %v1302_v41 }
 0x4a7   :  { %v1330_v57 = vmul.f32 %v1856_v55, %v1298_v23  ;;  %v1318_v62 = vadd.f32 %v1854_v27, %v1317_v44  ;;  %v1858_v36 = vpop.eup %1857  ;;  %vm1335_vm1 = vweird.f32 %v1856_v55 }
 0x4a8   :  { %v1307_v20 = vsel %vm1306_vm13, %v1852_v24, %v1303_v56  ;;  %vm1336_vm3 = vmor %vm1334_vm2, %vm1335_vm1 }
 0x4a9   :  { %v1331_v14 = vsub.f32 1.0, %v1330_v57  ;;  %v1312_v42 = vsel %vm1309_vm15, %v1311_v61, %v1307_v20  ;;  %v1322_v47 = vsel %vm1321_vm14, %v1854_v27, %v1318_v62 }
 0x4aa   :  { %v1327_v38 = vsel %vm1324_vm0, %v1326_v1, %v1322_v47  ;;  %v1346_v54 = vmul.f32 %v1858_v36, %v1312_v42 }
 0x4ab   :  { %v1345_v6 = vmul.f32 %v1327_v38, %v2999_v4  ;;  %v1332_v10 = vmul.f32 %v1856_v55, %v1331_v14  ;;  %v178_v4 = vpop.permute.xlu2 %177 }
 0x4ac   :  { %v220_v31 = vmul.f32 %v3582_v45, %v178_v4  ;;  %v221_v49 = vmul.f32 %v3583_v0, %v178_v4  ;;  %v222_v7 = vmul.f32 %v3585_v32, %v178_v4  ;;  %v223_v32 = vmul.f32 %v3590_v37, %v178_v4 }
 0x4ad   :  { %v3082_v48 = vadd.f32 %v1346_v54, %v1345_v6  ;;  %v1333_v35 = vadd.f32 %v1856_v55, %v1332_v10 }
 0x4ae   :  { %v252_v52 = vadd.f32 %v220_v31, %v144_v13  ;;  %v253_v53 = vadd.f32 %v221_v49, %v145_v59  ;;  %v254_v22 = vadd.f32 %v222_v7, %v146_v12  ;;  %v255_v34 = vadd.f32 %v223_v32, %v147_v21  ;;  %v1647_v21 = vld [vmem:[%s3152_s4 + $0x38] sm:$0xff] }
 0x4af   :  { %1859 = vtanh.f32 %v3082_v48  ;;  %v1337_v58 = vsel %vm1336_vm3, %v1856_v55, %v1333_v35 }
 0x4b0   :  { %v1342_v18 = vsel %vm1339_vm4, %v1341_v26, %v1337_v58  ;;  %v3090_v30 = vadd.f32 %v3586_v2, %v252_v52  ;;  %v3093_v46 = vadd.f32 %v3587_v11, %v253_v53  ;;  %v3100_v2 = vadd.f32 %v3588_v51, %v254_v22 }
 0x4b1   :  { %v3106_v51 = vadd.f32 %v3591_v17, %v255_v34 }
 0x4b5   :  { %v1860_v5 = vpop.eup %1859 }
 0x4b6   :  { %v1349_v3 = vmul.f32 %v1860_v5, %v1342_v18 }
 0x4b8   :  { %1370 = vmatmul.f32.vlgmr.msra.gmra.mxu0 %v1349_v3  ;;  %1390 = vmatmul.f32.vlgmr.msra.gmra.mxu1 %v1349_v3 }
 0x4b9   :  { %1410 = vmatmul.f32.vlgmr.msra.gmra.mxu2 %v1349_v3  ;;  %1430 = vmatmul.f32.vlgmr.msra.gmra.mxu3 %v1349_v3 }
 0x4ba   :  { %1666 = vmatpush.msra.mxu0 %v1647_v21 }
 0x535   :  { %v1371_v16 = vpop.f32.mrf.mxu0  ;;  %v1391_v45 = vpop.f32.mrf.mxu1 }
 0x536   :  { %v1372_v0 = vadd.f32 %v1371_v16, %v3090_v30  ;;  %v1392_v63 = vadd.f32 %v1391_v45, %v3093_v46 }
 0x538   :  { %v1719_v19 = vmul.f32 -1.442695, %v1372_v0  ;;  %v1720_v23 = vmul.f32 -1.442695, %v1392_v63 }
 0x53a   :  { %1861 = vpow2.f32 %v1719_v19 }
 0x53b   :  { %1863 = vpow2.f32 %v1720_v23 }
 0x53c   :  { %v1411_v11 = vpop.f32.mrf.mxu2  ;;  %v1431_v39 = vpop.f32.mrf.mxu3 }
 0x53d   :  { %v1412_v24 = vadd.f32 %v1411_v11, %v3100_v2  ;;  %v1432_v37 = vadd.f32 %v1431_v39, %v3106_v51 }
 0x53f   :  { %v1721_v25 = vmul.f32 -1.442695, %v1412_v24 }
 0x540   :  { %v1862_v27 = vpop.eup %1861 }
 0x541   :  { %v1864_v28 = vpop.eup %1863  ;;  %v1443_v29 = vadd.f32 1.0, %v1862_v27  ;;  %1865 = vpow2.f32 %v1721_v25  ;;  %v1644_v25 = vld [vmem:[%s3152_s4 + $0x20] sm:$0xff] }
 0x542   :  { %v1444_v33 = vadd.f32 1.0, %v1864_v28 }
 0x543   :  { %1867 = vrcp.f32 %v1443_v29  ;;  %v1457_v57 = vand.u32 2147483648, %v1443_v29  ;;  %v1455_v1 = vand.u32 2147483647, %v1443_v29  ;;  %vm1451_vm7 = vweird.f32 %v1443_v29 }
 0x544   :  { %1869 = vrcp.f32 %v1444_v33  ;;  %v1472_v61 = vand.u32 2147483648, %v1444_v33  ;;  %v1470_v17 = vand.u32 2147483647, %v1444_v33  ;;  %vm1466_vm8 = vweird.f32 %v1444_v33 }
 0x545   :  { %v1458_v47 = vor.u32 1.1754944e-38, %v1457_v57  ;;  %vm1456_vm11 = vcmp.eq.f32.partialorder %v1455_v1, 8.507059e+37  ;;  %v1640_v57 = vld [vmem:[%s3152_s4] sm:$0xff] }
 0x546   :  { %v1473_v54 = vor.u32 1.1754944e-38, %v1472_v61  ;;  %vm1471_vm12 = vcmp.eq.f32.partialorder %v1470_v17, 8.507059e+37 }
 0x547   :  { %v1866_v40 = vpop.eup %1865 }
 0x548   :  { %v1445_v41 = vadd.f32 1.0, %v1866_v40 }
 0x549   :  { %v1868_v43 = vpop.eup %1867 }
 0x54a   :  { %v1870_v44 = vpop.eup %1869  ;;  %v1447_v60 = vmul.f32 %v1868_v43, %v1443_v29  ;;  %1871 = vrcp.f32 %v1445_v41  ;;  %vm1452_vm5 = vweird.f32 %v1868_v43  ;;  %v1487_v8 = vand.u32 2147483648, %v1445_v41  ;;  %v1643_v29 = vld [vmem:[%s3152_s4 + $0x18] sm:$0xff] }
 0x54b   :  { %v1462_v50 = vmul.f32 %v1870_v44, %v1444_v33  ;;  %1873 = vtanh.f32 %v1432_v37  ;;  %vm1467_vm6 = vweird.f32 %v1870_v44  ;;  %vm1453_vm9 = vmor %vm1451_vm7, %vm1452_vm5  ;;  %vm1481_vm14 = vweird.f32 %v1445_v41 }
 0x54c   :  { %v1448_v55 = vsub.f32 1.0, %v1447_v60  ;;  %vm1468_vm10 = vmor %vm1466_vm8, %vm1467_vm6  ;;  %v1485_v31 = vand.u32 2147483647, %v1445_v41  ;;  %v1488_v13 = vor.u32 1.1754944e-38, %v1487_v8 }
 0x54d   :  { %v1463_v56 = vsub.f32 1.0, %v1462_v50 }
 0x54e   :  { %v1449_v62 = vmul.f32 %v1868_v43, %v1448_v55  ;;  %vm1486_vm0 = vcmp.eq.f32.partialorder %v1485_v31, 8.507059e+37 }
 0x54f   :  { %v1464_v20 = vmul.f32 %v1870_v44, %v1463_v56 }
 0x550   :  { %v1872_v36 = vpop.eup %1871  ;;  %v1450_v14 = vadd.f32 %v1868_v43, %v1449_v62 }
 0x551   :  { %v1477_v42 = vmul.f32 %v1872_v36, %v1445_v41  ;;  %v1465_v38 = vadd.f32 %v1870_v44, %v1464_v20  ;;  %v1874_v10 = vpop.eup %1873  ;;  %vm1482_vm13 = vweird.f32 %v1872_v36  ;;  %v1642_v41 = vld [vmem:[%s3152_s4 + $0x10] sm:$0xff] }
 0x552   :  { %v1454_v6 = vsel %vm1453_vm9, %v1868_v43, %v1450_v14  ;;  %vm1483_vm15 = vmor %vm1481_vm14, %vm1482_vm13  ;;  %vm1655_vm13 = vcmask 523264  }
 0x553   :  { %v1478_v35 = vsub.f32 1.0, %v1477_v42  ;;  %v1459_v15 = vsel %vm1456_vm11, %v1458_v47, %v1454_v6  ;;  %v1469_v9 = vsel %vm1468_vm10, %v1870_v44, %v1465_v38  ;;  %v1641_v44 = vld [vmem:[%s3152_s4 + $0x8] sm:$0xff] }
 0x554   :  { %v1474_v58 = vsel %vm1471_vm12, %v1473_v54, %v1469_v9  ;;  %v1493_v26 = vmul.f32 %v1874_v10, %v1459_v15 }
 0x555   :  { %v1492_v5 = vmul.f32 %v1474_v58, %v3082_v48  ;;  %v1479_v18 = vmul.f32 %v1872_v36, %v1478_v35 }
 0x557   :  { %v3110_v3 = vadd.f32 %v1493_v26, %v1492_v5  ;;  %v1480_v4 = vadd.f32 %v1872_v36, %v1479_v18 }
 0x559   :  { %1875 = vtanh.f32 %v3110_v3  ;;  %v1484_v49 = vsel %vm1483_vm15, %v1872_v36, %v1480_v4 }
 0x55a   :  { %v1489_v52 = vsel %vm1486_vm0, %v1488_v13, %v1484_v49 }
 0x55f   :  { %v1876_v59 = vpop.eup %1875 }
 0x560   :  { %v1496_v53 = vmul.f32 %v1876_v59, %v1489_v52 }
 0x562   :  { %1513 = vmatmul.f32.vlgmr.msrb.gmra.mxu0 %v1496_v53  ;;  %1533 = vmatmul.f32.vlgmr.msrb.gmra.mxu1 %v1496_v53 }
 0x563   :  { %1553 = vmatmul.f32.vlgmr.msrb.gmra.mxu2 %v1496_v53  ;;  %1573 = vmatmul.f32.vlgmr.msrb.gmra.mxu3 %v1496_v53 }
 0x5df   :  { %v1514_v48 = vpop.f32.mrf.mxu0  ;;  %v1534_v7 = vpop.f32.mrf.mxu1 }
 0x5e0   :  { %v1515_v12 = vadd.f32 %v1514_v48, %v3090_v30  ;;  %v1535_v16 = vadd.f32 %v1534_v7, %v3093_v46  ;;  %v1646_v30 = vld [vmem:[%s3152_s4 + $0x30] sm:$0xff]  ;;  %v1645_v46 = vld [vmem:[%s3152_s4 + $0x28] sm:$0xff]  ;;  %s2042_s4 = smov 64  }
 0x5e1   :  { %1667 = vmatpush.msra.mxu0 %v1646_v30 }
 0x5e2   :  { %v1722_v45 = vmul.f32 -1.442695, %v1515_v12  ;;  %v1723_v0 = vmul.f32 -1.442695, %v1535_v16 }
 0x5e3   :  { %1668 = vmatpush.msra.mxu0 %v1645_v46 }
 0x5e4   :  { %1877 = vpow2.f32 %v1722_v45 }
 0x5e5   :  { %1879 = vpow2.f32 %v1723_v0  ;;  %1669 = vmatpush.msra.mxu0 %v1644_v25 }
 0x5e6   :  { %v1554_v63 = vpop.f32.mrf.mxu2 }
 0x5e7   :  { %v1555_v22 = vadd.f32 %v1554_v63, %v3100_v2  ;;  %v1574_v2 = vpop.f32.mrf.mxu3  ;;  %1670 = vmatpush.msra.mxu0 %v1643_v29 }
 0x5e8   :  { %v1575_v34 = vadd.f32 %v1574_v2, %v3106_v51 }
 0x5e9   :  { %v1724_v19 = vmul.f32 -1.442695, %v1555_v22  ;;  %1671 = vmatpush.msra.mxu0 %v1642_v41 }
 0x5ea   :  { %v1878_v23 = vpop.eup %1877 }
 0x5eb   :  { %v1880_v11 = vpop.eup %1879  ;;  %v1586_v24 = vadd.f32 1.0, %v1878_v23  ;;  %1881 = vpow2.f32 %v1724_v19  ;;  %1672 = vmatpush.msra.mxu0 %v1641_v44 }
 0x5ec   :  { %v1587_v32 = vadd.f32 1.0, %v1880_v11 }
 0x5ed   :  { %1883 = vrcp.f32 %v1586_v24  ;;  %v1600_v50 = vand.u32 2147483648, %v1586_v24  ;;  %v1598_v56 = vand.u32 2147483647, %v1586_v24  ;;  %vm1594_vm3 = vweird.f32 %v1586_v24  ;;  %1673 = vmatpush.msra.mxu0 %v1640_v57 }
 0x5ee   :  { %1885 = vrcp.f32 %v1587_v32  ;;  %v1615_v51 = vand.u32 2147483648, %v1587_v32  ;;  %v1613_v62 = vand.u32 2147483647, %v1587_v32  ;;  %vm1609_vm4 = vweird.f32 %v1587_v32 }
 0x5ef   :  { %v1601_v36 = vor.u32 1.1754944e-38, %v1600_v50  ;;  %vm1599_vm7 = vcmp.eq.f32.partialorder %v1598_v56, 8.507059e+37 }
 0x5f0   :  { %v1616_v42 = vor.u32 1.1754944e-38, %v1615_v51  ;;  %vm1614_vm8 = vcmp.eq.f32.partialorder %v1613_v62, 8.507059e+37 }
 0x5f1   :  { %v1882_v27 = vpop.eup %1881 }
 0x5f2   :  { %v1588_v28 = vadd.f32 1.0, %v1882_v27 }
 0x5f3   :  { %v1884_v33 = vpop.eup %1883 }
 0x5f4   :  { %v1886_v39 = vpop.eup %1885  ;;  %v1590_v40 = vmul.f32 %v1884_v33, %v1586_v24  ;;  %1887 = vrcp.f32 %v1588_v28  ;;  %vm1595_vm1 = vweird.f32 %v1884_v33  ;;  %v1630_v18 = vand.u32 2147483648, %v1588_v28 }
 0x5f5   :  { %v1605_v43 = vmul.f32 %v1886_v39, %v1587_v32  ;;  %1889 = vtanh.f32 %v1575_v34  ;;  %vm1610_vm2 = vweird.f32 %v1886_v39  ;;  %vm1596_vm5 = vmor %vm1594_vm3, %vm1595_vm1  ;;  %vm1624_vm10 = vweird.f32 %v1588_v28 }
 0x5f6   :  { %v1591_v37 = vsub.f32 1.0, %v1590_v40  ;;  %vm1611_vm6 = vmor %vm1609_vm4, %vm1610_vm2  ;;  %v1628_v4 = vand.u32 2147483647, %v1588_v28  ;;  %v1631_v31 = vor.u32 1.1754944e-38, %v1630_v18 }
 0x5f7   :  { %v1606_v60 = vsub.f32 1.0, %v1605_v43 }
 0x5f8   :  { %v1592_v55 = vmul.f32 %v1884_v33, %v1591_v37  ;;  %vm1629_vm12 = vcmp.eq.f32.partialorder %v1628_v4, 8.507059e+37 }
 0x5f9   :  { %v1607_v61 = vmul.f32 %v1886_v39, %v1606_v60 }
 0x5fa   :  { %v1888_v1 = vpop.eup %1887  ;;  %v1593_v20 = vadd.f32 %v1884_v33, %v1592_v55 }
 0x5fb   :  { %v1620_v17 = vmul.f32 %v1888_v1, %v1588_v28  ;;  %v1608_v14 = vadd.f32 %v1886_v39, %v1607_v61  ;;  %v1890_v38 = vpop.eup %1889  ;;  %vm1625_vm9 = vweird.f32 %v1888_v1 }
 0x5fc   :  { %v1597_v47 = vsel %vm1596_vm5, %v1884_v33, %v1593_v20  ;;  %vm1626_vm11 = vmor %vm1624_vm10, %vm1625_vm9 }
 0x5fd   :  { %v1602_v54 = vsel %vm1599_vm7, %v1601_v36, %v1597_v47  ;;  %v1612_v6 = vsel %vm1611_vm6, %v1886_v39, %v1608_v14  ;;  %v1621_v10 = vsub.f32 1.0, %v1620_v17 }
 0x5fe   :  { %v1617_v35 = vsel %vm1614_vm8, %v1616_v42, %v1612_v6  ;;  %v1636_v15 = vmul.f32 %v1890_v38, %v1602_v54 }
 0x5ff   :  { %v1635_v9 = vmul.f32 %v1617_v35, %v3110_v3  ;;  %v1622_v58 = vmul.f32 %v1888_v1, %v1621_v10  ;;  %v1748_v3 = vld [vmem:[%s3153_s5] ss:$0 sm:$0xff] }
 0x601   :  { %v1637_v26 = vadd.f32 %v1636_v15, %v1635_v9  ;;  %v1623_v5 = vadd.f32 %v1888_v1, %v1622_v58 }
 0x603   :  { %1891 = vtanh.f32 %v1637_v26  ;;  %v1627_v8 = vsel %vm1626_vm11, %v1888_v1, %v1623_v5 }
 0x604   :  { %v1632_v13 = vsel %vm1629_vm12, %v1631_v31, %v1627_v8 }
 0x609   :  { %v1892_v49 = vpop.eup %1891 }
 0x60a   :  { %v1639_v59 = vmul.f32 %v1892_v49, %v1632_v13 }
 0x60c   :  { %1653 = vrot.lane.b32.xlu1 %v1639_v59, %s2042_s4 }
 0x67e   :  { %v1654_v52 = vpop.permute.xlu1 %1653 }
 0x67f   :  { %1725 = vmatmul.msk.f32.vlgmr.msra.gmra.mxu0 %vm1655_vm13, %v1654_v52 }
 0x6fc   :  { %v1675_v53 = vpop.f32.mrf.mxu0 }
 0x6fd   :  { %v1676_v48 = vadd.f32 %v1748_v3, %v1675_v53 }
 0x6ff   :  { %1678 = vst [vmem:[#allocation8] sm:$0xff] %v1676_v48 }
 0x700   :  { %1689 = dma.vmem_to_hbm [thread:$0]  %s1685_s15, 128, %s1687_s18, [#allocation5]  }
 0x701   :  { %2033 = dma.done.wait [#allocation5], 128  }
 0x702   :  { %2034 = vsyncadd [#allocation5], 4294967168 }
 0x703   :  { %1694 = vsyncpa [#allocation4], 1 }
 0x704   :  { %1695 = vsyncpa [#allocation7], 1 }
 0x705   :  { %1696 = vsyncpa [#allocation5], 1 }

</bundles_post_ra>
